<compile_context>
chip_gen: v6e
topology: v6e:2x2x1
jax: 0.10.0
libtpu: 0.0.40
codegen_flags: <defaults>
</compile_context>

<pallas_src>
import math

import numpy as np
import jax
import jax.numpy as jnp
from jax import lax
from jax.experimental import pallas as pl
from jax.experimental.pallas import tpu as pltpu

# -----------------------------------------------------------------------------
# Config consistent with Attention2dDownsample's constructor (small shapes)
# -----------------------------------------------------------------------------
B = 2
DIM = 16            # input channels (dim)
KEY_DIM = 8
NUM_HEADS = 2
ATTN_RATIO = 2
RES = 8             # H == W == resolution
OUT_DIM = 24

RES2 = math.ceil(RES / 2)
N = RES * RES                   # 64
N2 = RES2 * RES2                # 16
D = ATTN_RATIO * KEY_DIM        # per-head value dim (16)
KH = KEY_DIM * NUM_HEADS        # q/k channels (16)
DH = D * NUM_HEADS              # v channels / self.dh (32)
SCALE = KEY_DIM ** (-0.5)
BN_EPS = 1e-5
INV_SQRT2 = 1.0 / math.sqrt(2.0)

BN_TOK = B * N                  # 128  (batch-stacked full-res tokens)
BN2_TOK = B * N2                # 32   (batch-stacked downsampled tokens)
NTAPS = 9                       # 3x3 depthwise taps

# ---- packed parameter-slab layout (static offsets) --------------------------
# bf16 MXU-weight slab  (WSLAB_ROWS, 128)
S_ROWS = NTAPS * BN2_TOK        # 288 : 0/1 gather matrix (9 taps, batch block-diag)
MQ_ROW = S_ROWS                 # 288 : M_all (DIM, NUM_HEADS*DIM)
WV_ROW = MQ_ROW + DIM           # 304 : wv    (DIM, DH)
WP_ROW = WV_ROW + DIM           # 320 : wp    (DH, OUT_DIM)
WSLAB_ROWS = WP_ROW + DH        # 352
# f32 bias / bias-table slab (FSLAB_ROWS, 64)
MISC_ROW = NUM_HEADS * N2       # 32  : rows 32..35 = c_all, bv, [local_b|bvl], bp
TAPW_ROW = 40                   # 40  : rows 40..48 = per-tap dw weights [lqw|vlw]
FSLAB_ROWS = 56


# -----------------------------------------------------------------------------
# In-kernel math helpers
# -----------------------------------------------------------------------------
def _erf(z):
    # TODO(synk): lax.erf may lack a Mosaic lowering; use A&S 7.1.26 polynomial
    # (|abs err| < 1.5e-7).  Division replaced by the EUP approximate reciprocal.
    a1, a2, a3, a4, a5 = 0.254829592, -0.284496736, 1.421413741, -1.453152027, 1.061405429
    pp = 0.3275911
    sgn = jnp.where(z >= 0.0, 1.0, -1.0)
    az = jnp.abs(z)
    t = pl.reciprocal(1.0 + pp * az, approx=True)
    poly = ((((a5 * t + a4) * t + a3) * t + a2) * t + a1) * t
    return sgn * (1.0 - poly * jnp.exp(-az * az))


def _gelu(y):
    return 0.5 * y * (1.0 + _erf(y * INV_SQRT2))   # exact-erf GELU (nn.GELU)


# -----------------------------------------------------------------------------
# The single fused Pallas kernel (whole batch, single invocation, no grid)
# -----------------------------------------------------------------------------
def _fused_kernel(x_ref, wslab_ref, fslab_ref, out_ref):
    x = x_ref[...]                                                 # (B*N, DIM) bf16

    # ---- static slices of the two packed parameter slabs ----
    s_gather = wslab_ref[0:S_ROWS, :]                              # (288,128) 0/1 bf16
    m_all = wslab_ref[MQ_ROW:MQ_ROW + DIM, 0:NUM_HEADS * DIM]      # (16,32) bf16
    w_v = wslab_ref[WV_ROW:WV_ROW + DIM, 0:DH]                     # (16,32) bf16
    w_p = wslab_ref[WP_ROW:WP_ROW + DH, 0:OUT_DIM]                 # (32,24) bf16

    bias_tab = fslab_ref[0:NUM_HEADS * N2, :]                      # (32,64) f32
    misc = fslab_ref[MISC_ROW:MISC_ROW + 8, :]                     # (8,64)  f32
    c_all = misc[0:1, 0:NUM_HEADS * DIM]                           # (1,32)
    b_v = misc[1:2, 0:DH]                                          # (1,32)
    lv_bias = misc[2:3, 0:DIM + DH]                                # (1,48) [local_b | bvl]
    b_p = misc[3:4, 0:OUT_DIM]                                     # (1,24)
    tap_w = fslab_ref[TAPW_ROW:TAPW_ROW + NTAPS, 0:DIM + DH]       # (9,48) [lqw | vlw]

    # ---- v = 1x1 conv + BN (folded), whole batch stacked on sublanes ----
    v_f32 = jnp.dot(x, w_v, preferred_element_type=jnp.float32) + b_v   # (128,32)
    v_bf = v_f32.astype(jnp.bfloat16)

    # ---- both 3x3 stride-2 depthwise convs + AvgPool via ONE gather matmul ----
    xv = jnp.concatenate([x, v_bf], axis=1)                        # (128,48) bf16
    g = jnp.dot(s_gather, xv, preferred_element_type=jnp.float32)  # (288,48): tap-major gathered tokens
    acc = jnp.zeros((BN2_TOK, DIM + DH), jnp.float32)
    for t in range(NTAPS):                                         # 9 fused VPU MACs
        acc = acc + g[t * BN2_TOK:(t + 1) * BN2_TOK, :] * tap_w[t:t + 1, :]
    acc = acc + lv_bias
    pool_q = g[4 * BN2_TOK:5 * BN2_TOK, 0:DIM]                     # center tap == AvgPool2d(1,2,0)
    q_pre = acc[:, 0:DIM] + pool_q                                 # (32,16) local_q + pool_q
    v_local = acc[:, DIM:DIM + DH]                                 # (32,32)

    # ---- fused q/k projection (SCALE + BN folded, k eliminated algebraically) ----
    q_eff = jnp.dot(q_pre.astype(jnp.bfloat16), m_all,
                    preferred_element_type=jnp.float32) + c_all    # (32,32)

    # ---- attention per (batch, head); everything stays on-chip ----
    y_blocks = []
    for b in range(B):
        x_b = x[b * N:(b + 1) * N, :]                              # (64,16) bf16
        v_b = v_bf[b * N:(b + 1) * N, :]                           # (64,32) bf16
        head_out = []
        for h in range(NUM_HEADS):
            qe = q_eff[b * N2:(b + 1) * N2, h * DIM:(h + 1) * DIM].astype(jnp.bfloat16)
            s = lax.dot_general(qe, x_b,
                                dimension_numbers=(((1,), (1,)), ((), ())),
                                preferred_element_type=jnp.float32)          # (16,64)
            s = s + bias_tab[h * N2:(h + 1) * N2, :]
            s = s - jnp.max(s, axis=-1, keepdims=True)
            p = jnp.exp(s)
            den = jnp.sum(p, axis=-1, keepdims=True)
            r = pl.reciprocal(den, approx=True)
            r = r * (2.0 - den * r)                                # one Newton step
            p = p * r
            head_out.append(jnp.dot(p.astype(jnp.bfloat16),
                                    v_b[:, h * D:(h + 1) * D],
                                    preferred_element_type=jnp.float32))     # (16,16)
        o_b = jnp.concatenate(head_out, axis=1)                    # (16,32)
        y_blocks.append(_gelu(o_b + v_local[b * N2:(b + 1) * N2, :]))
    y = jnp.concatenate(y_blocks, axis=0)                          # (32,32)

    # ---- final 1x1 conv + BN (folded): ONE (32,32)@(32,24) matmul ----
    out_ref[...] = jnp.dot(y.astype(jnp.bfloat16), w_p,
                           preferred_element_type=jnp.float32) + b_p


def _fused_pallas(x_tok_bf, wslab, fslab):
    # Single invocation, whole arrays resident in VMEM (default BlockSpecs):
    # the problem is latency/overhead bound, so no grid / no tiling.
    return pl.pallas_call(
        _fused_kernel,
        out_shape=jax.ShapeDtypeStruct((BN2_TOK, OUT_DIM), jnp.float32),
    )(x_tok_bf, wslab, fslab)


# -----------------------------------------------------------------------------
# Parameters (deterministic synthetic init) and BN folding
# -----------------------------------------------------------------------------
def init_params(key):
    keys = iter(jax.random.split(key, 64))

    def nrm(shape, scale=0.05):
        return scale * jax.random.normal(next(keys), shape, jnp.float32)

    def bn(c):
        return dict(gamma=1.0 + nrm((c,), 0.1), beta=nrm((c,), 0.05),
                    mean=nrm((c,), 0.02),
                    var=1.0 + 0.1 * jax.random.uniform(next(keys), (c,), jnp.float32))

    p = {}
    # LocalGlobalQuery.local : depthwise 3x3 s2 conv (bias=True)
    p['local_w'] = nrm((3, 3, 1, DIM))                 # HWIO, groups=DIM
    p['local_b'] = nrm((DIM,))
    # LocalGlobalQuery.proj : 1x1 conv DIM->KH + BN
    p['qproj_w'] = nrm((DIM, KH)); p['qproj_b'] = nrm((KH,)); p['qproj_bn'] = bn(KH)
    # k, v : 1x1 conv + BN
    p['k_w'] = nrm((DIM, KH)); p['k_b'] = nrm((KH,)); p['k_bn'] = bn(KH)
    p['v_w'] = nrm((DIM, DH)); p['v_b'] = nrm((DH,)); p['v_bn'] = bn(DH)
    # v_local : depthwise 3x3 s2 conv + BN
    p['vl_w'] = nrm((3, 3, 1, DH)); p['vl_b'] = nrm((DH,)); p['vl_bn'] = bn(DH)
    # proj : 1x1 conv DH->OUT_DIM + BN
    p['proj_w'] = nrm((DH, OUT_DIM)); p['proj_b'] = nrm((OUT_DIM,)); p['proj_bn'] = bn(OUT_DIM)
    # attention biases (num_heads, N)
    p['attn_biases'] = nrm((NUM_HEADS, N), 0.1)
    return p


def fold_bn_matmul(w, b, bn):
    scale = bn['gamma'] / jnp.sqrt(bn['var'] + BN_EPS)
    return w * scale[None, :], (b - bn['mean']) * scale + bn['beta']


def fold_bn_dw(w, b, bn):
    scale = bn['gamma'] / jnp.sqrt(bn['var'] + BN_EPS)
    return w * scale[None, None, None, :], (b - bn['mean']) * scale + bn['beta']


def attention_bias_table(biases):
    ky, kx = jnp.meshgrid(jnp.arange(RES), jnp.arange(RES), indexing='ij')
    k_pos = jnp.stack([ky.reshape(-1), kx.reshape(-1)])          # (2, N)
    qy, qx = jnp.meshgrid(jnp.arange(0, RES, 2), jnp.arange(0, RES, 2), indexing='ij')
    q_pos = jnp.stack([qy.reshape(-1), qx.reshape(-1)])          # (2, N2)
    rel = jnp.abs(q_pos[:, :, None] - k_pos[:, None, :])
    idx = rel[0] * RES + rel[1]                                  # (N2, N)
    return biases[:, idx]                                        # (NUM_HEADS, N2, N)


def build_gather_matrix():
    """0/1 token-gather matrix implementing both 3x3 stride-2 pad-1 depthwise
    convs (and the stride-2 avg-pool = center tap).  Taps stacked on sublanes,
    batch block-diagonal.  Shape (9*B*N2, B*N)."""
    S = np.zeros((NTAPS, B, N2, B, N), np.float32)
    for dy in (-1, 0, 1):
        for dx in (-1, 0, 1):
            t = (dy + 1) * 3 + (dx + 1)
            for oh in range(RES2):
                for ow in range(RES2):
                    ih, iw = 2 * oh + dy, 2 * ow + dx
                    if 0 <= ih < RES and 0 <= iw < RES:
                        for b in range(B):
                            S[t, b, oh * RES2 + ow, b, ih * RES + iw] = 1.0
    return jnp.asarray(S.reshape(NTAPS * BN2_TOK, BN_TOK), jnp.bfloat16)


def prepare_inference_params(p):
    """All parameter-only work hoisted out of the forward path (done once):
    BN folding, SCALE folding, algebraic q/k fusion, attention-bias gather
    table, depthwise-conv gather matrix, and packing into 2 slabs."""
    wq, bq = fold_bn_matmul(p['qproj_w'], p['qproj_b'], p['qproj_bn'])
    wk, _bk = fold_bn_matmul(p['k_w'], p['k_b'], p['k_bn'])
    wv, bv = fold_bn_matmul(p['v_w'], p['v_b'], p['v_bn'])
    wp, bp = fold_bn_matmul(p['proj_w'], p['proj_b'], p['proj_bn'])
    wvl, bvl = fold_bn_dw(p['vl_w'], p['vl_b'], p['vl_bn'])

    # Algebraic q/k fusion (SCALE folded in):
    #   softmax(SCALE*(q_pre Wq + bq)(x Wk + bk)^T + bias)
    # = softmax(q_pre[SCALE Wq Wk^T] x^T + [SCALE bq Wk^T] x^T + bias)
    # (terms constant along the softmax axis — involving bk — cancel).
    wq_h = wq.reshape(DIM, NUM_HEADS, KEY_DIM)
    wk_h = wk.reshape(DIM, NUM_HEADS, KEY_DIM)
    bq_h = bq.reshape(NUM_HEADS, KEY_DIM)
    M_all = jnp.concatenate(
        [SCALE * (wq_h[:, h, :] @ wk_h[:, h, :].T) for h in range(NUM_HEADS)], axis=1)  # (DIM, 2*DIM)
    c_all = jnp.concatenate(
        [SCALE * (bq_h[h] @ wk_h[:, h, :].T) for h in range(NUM_HEADS)], axis=0)        # (2*DIM,)

    bias_flat = attention_bias_table(p['attn_biases']).reshape(NUM_HEADS * N2, N)

    lqw = p['local_w'].reshape(NTAPS, DIM)          # local-query dw conv weights per tap
    vlw = wvl.reshape(NTAPS, DH)                    # v_local dw conv weights (BN folded)
    tapw = jnp.concatenate([lqw, vlw], axis=1)      # (9, 48) = [lqw | vlw]
    lvb = jnp.concatenate([p['local_b'], bvl])      # (48,)   = [local_b | bvl]

    # ---- bf16 MXU-weight slab ----
    wslab = jnp.zeros((WSLAB_ROWS, 128), jnp.bfloat16)
    wslab = wslab.at[0:S_ROWS, :].set(build_gather_matrix())
    wslab = wslab.at[MQ_ROW:MQ_ROW + DIM, 0:NUM_HEADS * DIM].set(M_all.astype(jnp.bfloat16))
    wslab = wslab.at[WV_ROW:WV_ROW + DIM, 0:DH].set(wv.astype(jnp.bfloat16))
    wslab = wslab.at[WP_ROW:WP_ROW + DH, 0:OUT_DIM].set(wp.astype(jnp.bfloat16))

    # ---- f32 bias / bias-table slab ----
    fslab = jnp.zeros((FSLAB_ROWS, 64), jnp.float32)
    fslab = fslab.at[0:NUM_HEADS * N2, 0:N].set(bias_flat)
    fslab = fslab.at[MISC_ROW + 0, 0:NUM_HEADS * DIM].set(c_all)
    fslab = fslab.at[MISC_ROW + 1, 0:DH].set(bv)
    fslab = fslab.at[MISC_ROW + 2, 0:DIM + DH].set(lvb)
    fslab = fslab.at[MISC_ROW + 3, 0:OUT_DIM].set(bp)
    fslab = fslab.at[TAPW_ROW:TAPW_ROW + NTAPS, 0:DIM + DH].set(tapw)

    return dict(wslab=wslab, fslab=fslab)


# -----------------------------------------------------------------------------
# Forward pass: wrapper is layout glue only (cast in, reshape out)
# -----------------------------------------------------------------------------
def attention2d_downsample(x_nchw, prep):
    x_tok = jnp.transpose(x_nchw, (0, 2, 3, 1)).reshape(BN_TOK, DIM).astype(jnp.bfloat16)
    out_flat = _fused_pallas(x_tok, prep['wslab'], prep['fslab'])   # (B*N2, OUT_DIM) f32
    return jnp.transpose(out_flat.reshape(B, RES2, RES2, OUT_DIM), (0, 3, 1, 2))


# -----------------------------------------------------------------------------
# Pure-JAX f32 reference (mirrors the PyTorch forward in eval mode)
# -----------------------------------------------------------------------------
def _dw_conv_s2(x_nhwc, w_hwio, groups):
    return jax.lax.conv_general_dilated(
        x_nhwc, w_hwio, window_strides=(2, 2), padding=((1, 1), (1, 1)),
        dimension_numbers=('NHWC', 'HWIO', 'NHWC'), feature_group_count=groups)


def reference(x_nchw, p):
    x_nhwc = jnp.transpose(x_nchw, (0, 2, 3, 1))
    local_q = _dw_conv_s2(x_nhwc, p['local_w'], DIM) + p['local_b']
    q_pre = (local_q + x_nhwc[:, ::2, ::2, :]).reshape(B, N2, DIM)
    x_tok = x_nhwc.reshape(B, N, DIM)

    wq, bq = fold_bn_matmul(p['qproj_w'], p['qproj_b'], p['qproj_bn'])
    wk, bk = fold_bn_matmul(p['k_w'], p['k_b'], p['k_bn'])
    wv, bv = fold_bn_matmul(p['v_w'], p['v_b'], p['v_bn'])
    wp, bp = fold_bn_matmul(p['proj_w'], p['proj_b'], p['proj_bn'])
    wvl, bvl = fold_bn_dw(p['vl_w'], p['vl_b'], p['vl_bn'])
    bias_tab = attention_bias_table(p['attn_biases'])

    q = q_pre @ wq + bq
    k = x_tok @ wk + bk
    v = x_tok @ wv + bv
    qh = q.reshape(B, N2, NUM_HEADS, KEY_DIM).transpose(0, 2, 1, 3)
    kh = k.reshape(B, N, NUM_HEADS, KEY_DIM).transpose(0, 2, 1, 3)
    vh = v.reshape(B, N, NUM_HEADS, D).transpose(0, 2, 1, 3)
    attn = jnp.einsum('bhqc,bhkc->bhqk', qh, kh) * SCALE + bias_tab[None]
    attn = jax.nn.softmax(attn, axis=-1)
    o = jnp.einsum('bhqk,bhkc->bhqc', attn, vh).transpose(0, 2, 1, 3).reshape(B, N2, DH)

    v_img = v.reshape(B, RES, RES, DH)
    v_local = (_dw_conv_s2(v_img, wvl, DH) + bvl).reshape(B, N2, DH)

    y = o + v_local
    y = 0.5 * y * (1.0 + jax.scipy.special.erf(y / math.sqrt(2.0)))
    out = y @ wp + bp
    return jnp.transpose(out.reshape(B, RES2, RES2, OUT_DIM), (0, 3, 1, 2))


if __name__ == "__main__":
    key = jax.random.PRNGKey(0)
    pkey, xkey = jax.random.split(key)
    params = init_params(pkey)
    prep = prepare_inference_params(params)        # hoisted: computed once
    x = jax.random.normal(xkey, (B, DIM, RES, RES), jnp.float32)   # NCHW like PyTorch

    fwd = jax.jit(attention2d_downsample)
    out = jax.block_until_ready(fwd(x, prep))
    ref = jax.block_until_ready(reference(x, params))

    assert out.shape == (B, OUT_DIM, RES2, RES2), out.shape
    max_err = float(jnp.max(jnp.abs(out - ref)))
    # bf16 MXU operands + EUP approx reciprocal (with one Newton step) vs the
    # pure-f32 reference: observed error is a few 1e-3, keep the 1e-2 budget.
    assert max_err < 1e-2, f"mismatch vs reference: {max_err}"
    print("KERNEL_OK")
</pallas_src>

<mosaic_0001>
module attributes {stable_mosaic.version = 11 : i64} {
  func.func @_fused_kernel(%arg0: memref<128x16xbf16, #tpu.memory_space<vmem>>, %arg1: memref<352x128xbf16, #tpu.memory_space<vmem>>, %arg2: memref<56x64xf32, #tpu.memory_space<vmem>>, %arg3: memref<32x24xf32, #tpu.memory_space<vmem>>) attributes {dimension_semantics = [], scalar_prefetch = 0 : i64, scratch_operands = 0 : i64, tpu.core_type = #tpu.core_type<tc>} {
    %c0 = arith.constant 0 : index
    %c0_0 = arith.constant 0 : index
    %0 = vector.load %arg0[%c0, %c0_0] : memref<128x16xbf16, #tpu.memory_space<vmem>>, vector<128x16xbf16>
    %c0_1 = arith.constant 0 : index
    %c0_2 = arith.constant 0 : index
    %1 = vector.load %arg1[%c0_1, %c0_2] : memref<352x128xbf16, #tpu.memory_space<vmem>>, vector<288x128xbf16>
    %c288 = arith.constant 288 : index
    %c0_3 = arith.constant 0 : index
    %2 = vector.load %arg1[%c288, %c0_3] : memref<352x128xbf16, #tpu.memory_space<vmem>>, vector<16x32xbf16>
    %c304 = arith.constant 304 : index
    %c0_4 = arith.constant 0 : index
    %3 = vector.load %arg1[%c304, %c0_4] : memref<352x128xbf16, #tpu.memory_space<vmem>>, vector<16x32xbf16>
    %c320 = arith.constant 320 : index
    %c0_5 = arith.constant 0 : index
    %4 = vector.load %arg1[%c320, %c0_5] : memref<352x128xbf16, #tpu.memory_space<vmem>>, vector<32x24xbf16>
    %c0_6 = arith.constant 0 : index
    %c0_7 = arith.constant 0 : index
    %5 = vector.load %arg2[%c0_6, %c0_7] : memref<56x64xf32, #tpu.memory_space<vmem>>, vector<32x64xf32>
    %c32 = arith.constant 32 : index
    %c0_8 = arith.constant 0 : index
    %6 = vector.load %arg2[%c32, %c0_8] : memref<56x64xf32, #tpu.memory_space<vmem>>, vector<8x64xf32>
    %7 = vector.extract_strided_slice %6 {offsets = [0, 0], sizes = [1, 32], strides = [1, 1]} : vector<8x64xf32> to vector<1x32xf32>
    %8 = vector.extract_strided_slice %6 {offsets = [1, 0], sizes = [1, 32], strides = [1, 1]} : vector<8x64xf32> to vector<1x32xf32>
    %9 = vector.extract_strided_slice %6 {offsets = [2, 0], sizes = [1, 48], strides = [1, 1]} : vector<8x64xf32> to vector<1x48xf32>
    %10 = vector.extract_strided_slice %6 {offsets = [3, 0], sizes = [1, 24], strides = [1, 1]} : vector<8x64xf32> to vector<1x24xf32>
    %c40 = arith.constant 40 : index
    %c0_9 = arith.constant 0 : index
    %11 = vector.load %arg2[%c40, %c0_9] : memref<56x64xf32, #tpu.memory_space<vmem>>, vector<9x48xf32>
    %cst = arith.constant dense<0.000000e+00> : vector<128x32xf32>
    %12 = tpu.matmul %0, %3, %cst {dimension_numbers = #tpu.dot_dimension_numbers<[1], [0], [0], [1], [0, 0, 1, 1], [], []>} : vector<128x16xbf16>, vector<16x32xbf16>, vector<128x32xf32> -> vector<128x32xf32>
    %13 = vector.broadcast %8 : vector<1x32xf32> to vector<128x32xf32>
    %14 = arith.addf %12, %13 : vector<128x32xf32>
    %15 = arith.truncf %14 : vector<128x32xf32> to vector<128x32xbf16>
    %16 = tpu.concatenate %0, %15 in 1 : vector<128x16xbf16>, vector<128x32xbf16> -> vector<128x48xbf16>
    %cst_10 = arith.constant dense<0.000000e+00> : vector<288x48xf32>
    %17 = tpu.matmul %1, %16, %cst_10 {dimension_numbers = #tpu.dot_dimension_numbers<[1], [0], [0], [1], [0, 0, 1, 1], [], []>} : vector<288x128xbf16>, vector<128x48xbf16>, vector<288x48xf32> -> vector<288x48xf32>
    %cst_11 = arith.constant 0.000000e+00 : f32
    %18 = vector.broadcast %cst_11 : f32 to vector<32x48xf32>
    %19 = vector.extract_strided_slice %17 {offsets = [0, 0], sizes = [32, 48], strides = [1, 1]} : vector<288x48xf32> to vector<32x48xf32>
    %20 = vector.extract_strided_slice %11 {offsets = [0, 0], sizes = [1, 48], strides = [1, 1]} : vector<9x48xf32> to vector<1x48xf32>
    %21 = vector.broadcast %20 : vector<1x48xf32> to vector<32x48xf32>
    %22 = arith.mulf %19, %21 : vector<32x48xf32>
    %23 = arith.addf %18, %22 : vector<32x48xf32>
    %24 = vector.extract_strided_slice %17 {offsets = [32, 0], sizes = [32, 48], strides = [1, 1]} : vector<288x48xf32> to vector<32x48xf32>
    %25 = vector.extract_strided_slice %11 {offsets = [1, 0], sizes = [1, 48], strides = [1, 1]} : vector<9x48xf32> to vector<1x48xf32>
    %26 = vector.broadcast %25 : vector<1x48xf32> to vector<32x48xf32>
    %27 = arith.mulf %24, %26 : vector<32x48xf32>
    %28 = arith.addf %23, %27 : vector<32x48xf32>
    %29 = vector.extract_strided_slice %17 {offsets = [64, 0], sizes = [32, 48], strides = [1, 1]} : vector<288x48xf32> to vector<32x48xf32>
    %30 = vector.extract_strided_slice %11 {offsets = [2, 0], sizes = [1, 48], strides = [1, 1]} : vector<9x48xf32> to vector<1x48xf32>
    %31 = vector.broadcast %30 : vector<1x48xf32> to vector<32x48xf32>
    %32 = arith.mulf %29, %31 : vector<32x48xf32>
    %33 = arith.addf %28, %32 : vector<32x48xf32>
    %34 = vector.extract_strided_slice %17 {offsets = [96, 0], sizes = [32, 48], strides = [1, 1]} : vector<288x48xf32> to vector<32x48xf32>
    %35 = vector.extract_strided_slice %11 {offsets = [3, 0], sizes = [1, 48], strides = [1, 1]} : vector<9x48xf32> to vector<1x48xf32>
    %36 = vector.broadcast %35 : vector<1x48xf32> to vector<32x48xf32>
    %37 = arith.mulf %34, %36 : vector<32x48xf32>
    %38 = arith.addf %33, %37 : vector<32x48xf32>
    %39 = vector.extract_strided_slice %17 {offsets = [128, 0], sizes = [32, 48], strides = [1, 1]} : vector<288x48xf32> to vector<32x48xf32>
    %40 = vector.extract_strided_slice %11 {offsets = [4, 0], sizes = [1, 48], strides = [1, 1]} : vector<9x48xf32> to vector<1x48xf32>
    %41 = vector.broadcast %40 : vector<1x48xf32> to vector<32x48xf32>
    %42 = arith.mulf %39, %41 : vector<32x48xf32>
    %43 = arith.addf %38, %42 : vector<32x48xf32>
    %44 = vector.extract_strided_slice %17 {offsets = [160, 0], sizes = [32, 48], strides = [1, 1]} : vector<288x48xf32> to vector<32x48xf32>
    %45 = vector.extract_strided_slice %11 {offsets = [5, 0], sizes = [1, 48], strides = [1, 1]} : vector<9x48xf32> to vector<1x48xf32>
    %46 = vector.broadcast %45 : vector<1x48xf32> to vector<32x48xf32>
    %47 = arith.mulf %44, %46 : vector<32x48xf32>
    %48 = arith.addf %43, %47 : vector<32x48xf32>
    %49 = vector.extract_strided_slice %17 {offsets = [192, 0], sizes = [32, 48], strides = [1, 1]} : vector<288x48xf32> to vector<32x48xf32>
    %50 = vector.extract_strided_slice %11 {offsets = [6, 0], sizes = [1, 48], strides = [1, 1]} : vector<9x48xf32> to vector<1x48xf32>
    %51 = vector.broadcast %50 : vector<1x48xf32> to vector<32x48xf32>
    %52 = arith.mulf %49, %51 : vector<32x48xf32>
    %53 = arith.addf %48, %52 : vector<32x48xf32>
    %54 = vector.extract_strided_slice %17 {offsets = [224, 0], sizes = [32, 48], strides = [1, 1]} : vector<288x48xf32> to vector<32x48xf32>
    %55 = vector.extract_strided_slice %11 {offsets = [7, 0], sizes = [1, 48], strides = [1, 1]} : vector<9x48xf32> to vector<1x48xf32>
    %56 = vector.broadcast %55 : vector<1x48xf32> to vector<32x48xf32>
    %57 = arith.mulf %54, %56 : vector<32x48xf32>
    %58 = arith.addf %53, %57 : vector<32x48xf32>
    %59 = vector.extract_strided_slice %17 {offsets = [256, 0], sizes = [32, 48], strides = [1, 1]} : vector<288x48xf32> to vector<32x48xf32>
    %60 = vector.extract_strided_slice %11 {offsets = [8, 0], sizes = [1, 48], strides = [1, 1]} : vector<9x48xf32> to vector<1x48xf32>
    %61 = vector.broadcast %60 : vector<1x48xf32> to vector<32x48xf32>
    %62 = arith.mulf %59, %61 : vector<32x48xf32>
    %63 = arith.addf %58, %62 : vector<32x48xf32>
    %64 = vector.broadcast %9 : vector<1x48xf32> to vector<32x48xf32>
    %65 = arith.addf %63, %64 : vector<32x48xf32>
    %66 = vector.extract_strided_slice %17 {offsets = [128, 0], sizes = [32, 16], strides = [1, 1]} : vector<288x48xf32> to vector<32x16xf32>
    %67 = vector.extract_strided_slice %65 {offsets = [0, 0], sizes = [32, 16], strides = [1, 1]} : vector<32x48xf32> to vector<32x16xf32>
    %68 = arith.addf %67, %66 : vector<32x16xf32>
    %69 = vector.extract_strided_slice %65 {offsets = [0, 16], sizes = [32, 32], strides = [1, 1]} : vector<32x48xf32> to vector<32x32xf32>
    %70 = arith.truncf %68 : vector<32x16xf32> to vector<32x16xbf16>
    %cst_12 = arith.constant dense<0.000000e+00> : vector<32x32xf32>
    %71 = tpu.matmul %70, %2, %cst_12 {dimension_numbers = #tpu.dot_dimension_numbers<[1], [0], [0], [1], [0, 0, 1, 1], [], []>} : vector<32x16xbf16>, vector<16x32xbf16>, vector<32x32xf32> -> vector<32x32xf32>
    %72 = vector.broadcast %7 : vector<1x32xf32> to vector<32x32xf32>
    %73 = arith.addf %71, %72 : vector<32x32xf32>
    %74 = vector.extract_strided_slice %0 {offsets = [0, 0], sizes = [64, 16], strides = [1, 1]} : vector<128x16xbf16> to vector<64x16xbf16>
    %75 = vector.extract_strided_slice %15 {offsets = [0, 0], sizes = [64, 32], strides = [1, 1]} : vector<128x32xbf16> to vector<64x32xbf16>
    %76 = vector.extract_strided_slice %73 {offsets = [0, 0], sizes = [16, 16], strides = [1, 1]} : vector<32x32xf32> to vector<16x16xf32>
    %77 = arith.truncf %76 : vector<16x16xf32> to vector<16x16xbf16>
    %cst_13 = arith.constant dense<0.000000e+00> : vector<16x64xf32>
    %78 = tpu.matmul %77, %74, %cst_13 {dimension_numbers = #tpu.dot_dimension_numbers<[1], [1], [0], [0], [0, 0, 1, 0], [], []>} : vector<16x16xbf16>, vector<64x16xbf16>, vector<16x64xf32> -> vector<16x64xf32>
    %79 = vector.extract_strided_slice %5 {offsets = [0, 0], sizes = [16, 64], strides = [1, 1]} : vector<32x64xf32> to vector<16x64xf32>
    %80 = arith.addf %78, %79 : vector<16x64xf32>
    %cst_14 = arith.constant dense<0xFF800000> : vector<16xf32>
    %81 = vector.multi_reduction <maximumf>, %80, %cst_14 [1] : vector<16x64xf32> to vector<16xf32>
    %82 = vector.shape_cast %81 : vector<16xf32> to vector<16x1xf32>
    %83 = vector.broadcast %82 : vector<16x1xf32> to vector<16x64xf32>
    %84 = arith.subf %80, %83 : vector<16x64xf32>
    %85 = math.exp %84 : vector<16x64xf32>
    %cst_15 = arith.constant dense<0.000000e+00> : vector<16xf32>
    %86 = vector.multi_reduction <add>, %85, %cst_15 [1] : vector<16x64xf32> to vector<16xf32>
    %87 = vector.shape_cast %86 : vector<16xf32> to vector<16x1xf32>
    %88 = tpu.reciprocal %87 {approx = true} : vector<16x1xf32> -> vector<16x1xf32>
    %89 = arith.mulf %87, %88 : vector<16x1xf32>
    %cst_16 = arith.constant 2.000000e+00 : f32
    %90 = vector.broadcast %cst_16 : f32 to vector<16x1xf32>
    %91 = arith.subf %90, %89 : vector<16x1xf32>
    %92 = arith.mulf %88, %91 : vector<16x1xf32>
    %93 = vector.broadcast %92 : vector<16x1xf32> to vector<16x64xf32>
    %94 = arith.mulf %85, %93 : vector<16x64xf32>
    %95 = arith.truncf %94 : vector<16x64xf32> to vector<16x64xbf16>
    %96 = vector.extract_strided_slice %75 {offsets = [0, 0], sizes = [64, 16], strides = [1, 1]} : vector<64x32xbf16> to vector<64x16xbf16>
    %cst_17 = arith.constant dense<0.000000e+00> : vector<16x16xf32>
    %97 = tpu.matmul %95, %96, %cst_17 {dimension_numbers = #tpu.dot_dimension_numbers<[1], [0], [0], [1], [0, 0, 1, 1], [], []>} : vector<16x64xbf16>, vector<64x16xbf16>, vector<16x16xf32> -> vector<16x16xf32>
    %98 = vector.extract_strided_slice %73 {offsets = [0, 16], sizes = [16, 16], strides = [1, 1]} : vector<32x32xf32> to vector<16x16xf32>
    %99 = arith.truncf %98 : vector<16x16xf32> to vector<16x16xbf16>
    %cst_18 = arith.constant dense<0.000000e+00> : vector<16x64xf32>
    %100 = tpu.matmul %99, %74, %cst_18 {dimension_numbers = #tpu.dot_dimension_numbers<[1], [1], [0], [0], [0, 0, 1, 0], [], []>} : vector<16x16xbf16>, vector<64x16xbf16>, vector<16x64xf32> -> vector<16x64xf32>
    %101 = vector.extract_strided_slice %5 {offsets = [16, 0], sizes = [16, 64], strides = [1, 1]} : vector<32x64xf32> to vector<16x64xf32>
    %102 = arith.addf %100, %101 : vector<16x64xf32>
    %cst_19 = arith.constant dense<0xFF800000> : vector<16xf32>
    %103 = vector.multi_reduction <maximumf>, %102, %cst_19 [1] : vector<16x64xf32> to vector<16xf32>
    %104 = vector.shape_cast %103 : vector<16xf32> to vector<16x1xf32>
    %105 = vector.broadcast %104 : vector<16x1xf32> to vector<16x64xf32>
    %106 = arith.subf %102, %105 : vector<16x64xf32>
    %107 = math.exp %106 : vector<16x64xf32>
    %cst_20 = arith.constant dense<0.000000e+00> : vector<16xf32>
    %108 = vector.multi_reduction <add>, %107, %cst_20 [1] : vector<16x64xf32> to vector<16xf32>
    %109 = vector.shape_cast %108 : vector<16xf32> to vector<16x1xf32>
    %110 = tpu.reciprocal %109 {approx = true} : vector<16x1xf32> -> vector<16x1xf32>
    %111 = arith.mulf %109, %110 : vector<16x1xf32>
    %cst_21 = arith.constant 2.000000e+00 : f32
    %112 = vector.broadcast %cst_21 : f32 to vector<16x1xf32>
    %113 = arith.subf %112, %111 : vector<16x1xf32>
    %114 = arith.mulf %110, %113 : vector<16x1xf32>
    %115 = vector.broadcast %114 : vector<16x1xf32> to vector<16x64xf32>
    %116 = arith.mulf %107, %115 : vector<16x64xf32>
    %117 = arith.truncf %116 : vector<16x64xf32> to vector<16x64xbf16>
    %118 = vector.extract_strided_slice %75 {offsets = [0, 16], sizes = [64, 16], strides = [1, 1]} : vector<64x32xbf16> to vector<64x16xbf16>
    %cst_22 = arith.constant dense<0.000000e+00> : vector<16x16xf32>
    %119 = tpu.matmul %117, %118, %cst_22 {dimension_numbers = #tpu.dot_dimension_numbers<[1], [0], [0], [1], [0, 0, 1, 1], [], []>} : vector<16x64xbf16>, vector<64x16xbf16>, vector<16x16xf32> -> vector<16x16xf32>
    %120 = tpu.concatenate %97, %119 in 1 : vector<16x16xf32>, vector<16x16xf32> -> vector<16x32xf32>
    %121 = vector.extract_strided_slice %69 {offsets = [0, 0], sizes = [16, 32], strides = [1, 1]} : vector<32x32xf32> to vector<16x32xf32>
    %122 = arith.addf %120, %121 : vector<16x32xf32>
    %cst_23 = arith.constant 5.000000e-01 : f32
    %123 = vector.broadcast %cst_23 : f32 to vector<16x32xf32>
    %124 = arith.mulf %123, %122 : vector<16x32xf32>
    %cst_24 = arith.constant 0.707106769 : f32
    %125 = vector.broadcast %cst_24 : f32 to vector<16x32xf32>
    %126 = arith.mulf %122, %125 : vector<16x32xf32>
    %cst_25 = arith.constant 0.000000e+00 : f32
    %127 = vector.broadcast %cst_25 : f32 to vector<16x32xf32>
    %128 = arith.cmpf oge, %126, %127 : vector<16x32xf32>
    %cst_26 = arith.constant 1.000000e+00 : f32
    %cst_27 = arith.constant -1.000000e+00 : f32
    %129 = vector.broadcast %cst_26 : f32 to vector<16x32xf32>
    %130 = vector.broadcast %cst_27 : f32 to vector<16x32xf32>
    %131 = arith.select %128, %129, %130 : vector<16x32xi1>, vector<16x32xf32>
    %132 = math.absf %126 : vector<16x32xf32>
    %cst_28 = arith.constant 0.327591091 : f32
    %133 = vector.broadcast %cst_28 : f32 to vector<16x32xf32>
    %134 = arith.mulf %133, %132 : vector<16x32xf32>
    %cst_29 = arith.constant 1.000000e+00 : f32
    %135 = vector.broadcast %cst_29 : f32 to vector<16x32xf32>
    %136 = arith.addf %135, %134 : vector<16x32xf32>
    %137 = tpu.reciprocal %136 {approx = true} : vector<16x32xf32> -> vector<16x32xf32>
    %cst_30 = arith.constant 1.06140542 : f32
    %138 = vector.broadcast %cst_30 : f32 to vector<16x32xf32>
    %139 = arith.mulf %138, %137 : vector<16x32xf32>
    %cst_31 = arith.constant -1.45315206 : f32
    %140 = vector.broadcast %cst_31 : f32 to vector<16x32xf32>
    %141 = arith.addf %139, %140 : vector<16x32xf32>
    %142 = arith.mulf %141, %137 : vector<16x32xf32>
    %cst_32 = arith.constant 1.42141378 : f32
    %143 = vector.broadcast %cst_32 : f32 to vector<16x32xf32>
    %144 = arith.addf %142, %143 : vector<16x32xf32>
    %145 = arith.mulf %144, %137 : vector<16x32xf32>
    %cst_33 = arith.constant -0.284496725 : f32
    %146 = vector.broadcast %cst_33 : f32 to vector<16x32xf32>
    %147 = arith.addf %145, %146 : vector<16x32xf32>
    %148 = arith.mulf %147, %137 : vector<16x32xf32>
    %cst_34 = arith.constant 0.254829586 : f32
    %149 = vector.broadcast %cst_34 : f32 to vector<16x32xf32>
    %150 = arith.addf %148, %149 : vector<16x32xf32>
    %151 = arith.mulf %150, %137 : vector<16x32xf32>
    %cst_35 = arith.constant 0.000000e+00 : f32
    %152 = vector.broadcast %cst_35 : f32 to vector<16x32xf32>
    %153 = arith.subf %152, %132 : vector<16x32xf32>
    %154 = arith.mulf %153, %132 : vector<16x32xf32>
    %155 = math.exp %154 : vector<16x32xf32>
    %156 = arith.mulf %151, %155 : vector<16x32xf32>
    %cst_36 = arith.constant 1.000000e+00 : f32
    %157 = vector.broadcast %cst_36 : f32 to vector<16x32xf32>
    %158 = arith.subf %157, %156 : vector<16x32xf32>
    %159 = arith.mulf %131, %158 : vector<16x32xf32>
    %cst_37 = arith.constant 1.000000e+00 : f32
    %160 = vector.broadcast %cst_37 : f32 to vector<16x32xf32>
    %161 = arith.addf %160, %159 : vector<16x32xf32>
    %162 = arith.mulf %124, %161 : vector<16x32xf32>
    %163 = vector.extract_strided_slice %0 {offsets = [64, 0], sizes = [64, 16], strides = [1, 1]} : vector<128x16xbf16> to vector<64x16xbf16>
    %164 = vector.extract_strided_slice %15 {offsets = [64, 0], sizes = [64, 32], strides = [1, 1]} : vector<128x32xbf16> to vector<64x32xbf16>
    %165 = vector.extract_strided_slice %73 {offsets = [16, 0], sizes = [16, 16], strides = [1, 1]} : vector<32x32xf32> to vector<16x16xf32>
    %166 = arith.truncf %165 : vector<16x16xf32> to vector<16x16xbf16>
    %cst_38 = arith.constant dense<0.000000e+00> : vector<16x64xf32>
    %167 = tpu.matmul %166, %163, %cst_38 {dimension_numbers = #tpu.dot_dimension_numbers<[1], [1], [0], [0], [0, 0, 1, 0], [], []>} : vector<16x16xbf16>, vector<64x16xbf16>, vector<16x64xf32> -> vector<16x64xf32>
    %168 = vector.extract_strided_slice %5 {offsets = [0, 0], sizes = [16, 64], strides = [1, 1]} : vector<32x64xf32> to vector<16x64xf32>
    %169 = arith.addf %167, %168 : vector<16x64xf32>
    %cst_39 = arith.constant dense<0xFF800000> : vector<16xf32>
    %170 = vector.multi_reduction <maximumf>, %169, %cst_39 [1] : vector<16x64xf32> to vector<16xf32>
    %171 = vector.shape_cast %170 : vector<16xf32> to vector<16x1xf32>
    %172 = vector.broadcast %171 : vector<16x1xf32> to vector<16x64xf32>
    %173 = arith.subf %169, %172 : vector<16x64xf32>
    %174 = math.exp %173 : vector<16x64xf32>
    %cst_40 = arith.constant dense<0.000000e+00> : vector<16xf32>
    %175 = vector.multi_reduction <add>, %174, %cst_40 [1] : vector<16x64xf32> to vector<16xf32>
    %176 = vector.shape_cast %175 : vector<16xf32> to vector<16x1xf32>
    %177 = tpu.reciprocal %176 {approx = true} : vector<16x1xf32> -> vector<16x1xf32>
    %178 = arith.mulf %176, %177 : vector<16x1xf32>
    %cst_41 = arith.constant 2.000000e+00 : f32
    %179 = vector.broadcast %cst_41 : f32 to vector<16x1xf32>
    %180 = arith.subf %179, %178 : vector<16x1xf32>
    %181 = arith.mulf %177, %180 : vector<16x1xf32>
    %182 = vector.broadcast %181 : vector<16x1xf32> to vector<16x64xf32>
    %183 = arith.mulf %174, %182 : vector<16x64xf32>
    %184 = arith.truncf %183 : vector<16x64xf32> to vector<16x64xbf16>
    %185 = vector.extract_strided_slice %164 {offsets = [0, 0], sizes = [64, 16], strides = [1, 1]} : vector<64x32xbf16> to vector<64x16xbf16>
    %cst_42 = arith.constant dense<0.000000e+00> : vector<16x16xf32>
    %186 = tpu.matmul %184, %185, %cst_42 {dimension_numbers = #tpu.dot_dimension_numbers<[1], [0], [0], [1], [0, 0, 1, 1], [], []>} : vector<16x64xbf16>, vector<64x16xbf16>, vector<16x16xf32> -> vector<16x16xf32>
    %187 = vector.extract_strided_slice %73 {offsets = [16, 16], sizes = [16, 16], strides = [1, 1]} : vector<32x32xf32> to vector<16x16xf32>
    %188 = arith.truncf %187 : vector<16x16xf32> to vector<16x16xbf16>
    %cst_43 = arith.constant dense<0.000000e+00> : vector<16x64xf32>
    %189 = tpu.matmul %188, %163, %cst_43 {dimension_numbers = #tpu.dot_dimension_numbers<[1], [1], [0], [0], [0, 0, 1, 0], [], []>} : vector<16x16xbf16>, vector<64x16xbf16>, vector<16x64xf32> -> vector<16x64xf32>
    %190 = vector.extract_strided_slice %5 {offsets = [16, 0], sizes = [16, 64], strides = [1, 1]} : vector<32x64xf32> to vector<16x64xf32>
    %191 = arith.addf %189, %190 : vector<16x64xf32>
    %cst_44 = arith.constant dense<0xFF800000> : vector<16xf32>
    %192 = vector.multi_reduction <maximumf>, %191, %cst_44 [1] : vector<16x64xf32> to vector<16xf32>
    %193 = vector.shape_cast %192 : vector<16xf32> to vector<16x1xf32>
    %194 = vector.broadcast %193 : vector<16x1xf32> to vector<16x64xf32>
    %195 = arith.subf %191, %194 : vector<16x64xf32>
    %196 = math.exp %195 : vector<16x64xf32>
    %cst_45 = arith.constant dense<0.000000e+00> : vector<16xf32>
    %197 = vector.multi_reduction <add>, %196, %cst_45 [1] : vector<16x64xf32> to vector<16xf32>
    %198 = vector.shape_cast %197 : vector<16xf32> to vector<16x1xf32>
    %199 = tpu.reciprocal %198 {approx = true} : vector<16x1xf32> -> vector<16x1xf32>
    %200 = arith.mulf %198, %199 : vector<16x1xf32>
    %cst_46 = arith.constant 2.000000e+00 : f32
    %201 = vector.broadcast %cst_46 : f32 to vector<16x1xf32>
    %202 = arith.subf %201, %200 : vector<16x1xf32>
    %203 = arith.mulf %199, %202 : vector<16x1xf32>
    %204 = vector.broadcast %203 : vector<16x1xf32> to vector<16x64xf32>
    %205 = arith.mulf %196, %204 : vector<16x64xf32>
    %206 = arith.truncf %205 : vector<16x64xf32> to vector<16x64xbf16>
    %207 = vector.extract_strided_slice %164 {offsets = [0, 16], sizes = [64, 16], strides = [1, 1]} : vector<64x32xbf16> to vector<64x16xbf16>
    %cst_47 = arith.constant dense<0.000000e+00> : vector<16x16xf32>
    %208 = tpu.matmul %206, %207, %cst_47 {dimension_numbers = #tpu.dot_dimension_numbers<[1], [0], [0], [1], [0, 0, 1, 1], [], []>} : vector<16x64xbf16>, vector<64x16xbf16>, vector<16x16xf32> -> vector<16x16xf32>
    %209 = tpu.concatenate %186, %208 in 1 : vector<16x16xf32>, vector<16x16xf32> -> vector<16x32xf32>
    %210 = vector.extract_strided_slice %69 {offsets = [16, 0], sizes = [16, 32], strides = [1, 1]} : vector<32x32xf32> to vector<16x32xf32>
    %211 = arith.addf %209, %210 : vector<16x32xf32>
    %cst_48 = arith.constant 5.000000e-01 : f32
    %212 = vector.broadcast %cst_48 : f32 to vector<16x32xf32>
    %213 = arith.mulf %212, %211 : vector<16x32xf32>
    %cst_49 = arith.constant 0.707106769 : f32
    %214 = vector.broadcast %cst_49 : f32 to vector<16x32xf32>
    %215 = arith.mulf %211, %214 : vector<16x32xf32>
    %cst_50 = arith.constant 0.000000e+00 : f32
    %216 = vector.broadcast %cst_50 : f32 to vector<16x32xf32>
    %217 = arith.cmpf oge, %215, %216 : vector<16x32xf32>
    %cst_51 = arith.constant 1.000000e+00 : f32
    %cst_52 = arith.constant -1.000000e+00 : f32
    %218 = vector.broadcast %cst_51 : f32 to vector<16x32xf32>
    %219 = vector.broadcast %cst_52 : f32 to vector<16x32xf32>
    %220 = arith.select %217, %218, %219 : vector<16x32xi1>, vector<16x32xf32>
    %221 = math.absf %215 : vector<16x32xf32>
    %cst_53 = arith.constant 0.327591091 : f32
    %222 = vector.broadcast %cst_53 : f32 to vector<16x32xf32>
    %223 = arith.mulf %222, %221 : vector<16x32xf32>
    %cst_54 = arith.constant 1.000000e+00 : f32
    %224 = vector.broadcast %cst_54 : f32 to vector<16x32xf32>
    %225 = arith.addf %224, %223 : vector<16x32xf32>
    %226 = tpu.reciprocal %225 {approx = true} : vector<16x32xf32> -> vector<16x32xf32>
    %cst_55 = arith.constant 1.06140542 : f32
    %227 = vector.broadcast %cst_55 : f32 to vector<16x32xf32>
    %228 = arith.mulf %227, %226 : vector<16x32xf32>
    %cst_56 = arith.constant -1.45315206 : f32
    %229 = vector.broadcast %cst_56 : f32 to vector<16x32xf32>
    %230 = arith.addf %228, %229 : vector<16x32xf32>
    %231 = arith.mulf %230, %226 : vector<16x32xf32>
    %cst_57 = arith.constant 1.42141378 : f32
    %232 = vector.broadcast %cst_57 : f32 to vector<16x32xf32>
    %233 = arith.addf %231, %232 : vector<16x32xf32>
    %234 = arith.mulf %233, %226 : vector<16x32xf32>
    %cst_58 = arith.constant -0.284496725 : f32
    %235 = vector.broadcast %cst_58 : f32 to vector<16x32xf32>
    %236 = arith.addf %234, %235 : vector<16x32xf32>
    %237 = arith.mulf %236, %226 : vector<16x32xf32>
    %cst_59 = arith.constant 0.254829586 : f32
    %238 = vector.broadcast %cst_59 : f32 to vector<16x32xf32>
    %239 = arith.addf %237, %238 : vector<16x32xf32>
    %240 = arith.mulf %239, %226 : vector<16x32xf32>
    %cst_60 = arith.constant 0.000000e+00 : f32
    %241 = vector.broadcast %cst_60 : f32 to vector<16x32xf32>
    %242 = arith.subf %241, %221 : vector<16x32xf32>
    %243 = arith.mulf %242, %221 : vector<16x32xf32>
    %244 = math.exp %243 : vector<16x32xf32>
    %245 = arith.mulf %240, %244 : vector<16x32xf32>
    %cst_61 = arith.constant 1.000000e+00 : f32
    %246 = vector.broadcast %cst_61 : f32 to vector<16x32xf32>
    %247 = arith.subf %246, %245 : vector<16x32xf32>
    %248 = arith.mulf %220, %247 : vector<16x32xf32>
    %cst_62 = arith.constant 1.000000e+00 : f32
    %249 = vector.broadcast %cst_62 : f32 to vector<16x32xf32>
    %250 = arith.addf %249, %248 : vector<16x32xf32>
    %251 = arith.mulf %213, %250 : vector<16x32xf32>
    %252 = tpu.concatenate %162, %251 in 0 : vector<16x32xf32>, vector<16x32xf32> -> vector<32x32xf32>
    %253 = arith.truncf %252 : vector<32x32xf32> to vector<32x32xbf16>
    %cst_63 = arith.constant dense<0.000000e+00> : vector<32x24xf32>
    %254 = tpu.matmul %253, %4, %cst_63 {dimension_numbers = #tpu.dot_dimension_numbers<[1], [0], [0], [1], [0, 0, 1, 1], [], []>} : vector<32x32xbf16>, vector<32x24xbf16>, vector<32x24xf32> -> vector<32x24xf32>
    %255 = vector.broadcast %10 : vector<1x24xf32> to vector<32x24xf32>
    %256 = arith.addf %254, %255 : vector<32x24xf32>
    %c0_64 = arith.constant 0 : index
    %c0_65 = arith.constant 0 : index
    %257 = vector.load %arg3[%c0_64, %c0_65] : memref<32x24xf32, #tpu.memory_space<vmem>>, vector<32x24xf32>
    tpu.vector_store %arg3[%c0_64, %c0_65], %256 {strides = array<i32>} : memref<32x24xf32, #tpu.memory_space<vmem>>, vector<32x24xf32>,
    return
  }
}

</mosaic_0001>

<bundles_post_ra>
// kernel: attention2d_downsample.1
= control target key start
LH: loop header
LB: loop body
LE: loop exit
PB: predicated region body
PF: predicated region fallthrough
CT: control target
= control target key end

     0   :  { %8 = vsyncpa [#allocation3], 0  ;;  %s2462_s0 = inlined_call_operand.vmem [shape: bf16[128,16], index: 0, kind: input, shape index: {}]   ;;  %s2463_s1 = inlined_call_operand.vmem [shape: bf16[352,128], index: 1, kind: input, shape index: {}]   ;;  %s2464_s2 = inlined_call_operand.hbm [shape: f32[56,64], index: 2, kind: input, shape index: {}]   ;;  %s2465_s3 = inlined_call_operand.hbm [shape: f32[32,24], index: 3, kind: output, shape index: {}]  }
   0x1   :  { %9 = vsyncpa [#allocation4], 0  ;;  %s1983_s12 = smov [#allocation2]  }
   0x2   :  { %s19_s13 = sshll.u32 %s1983_s12, 4  ;;  %s20_s13 = int_to_ptr.vmem [resolvable:$true] %s19_s13 }
   0x3   :  { %s1947_s14 = scalar_lea.vmem %s20_s13, 896  ;;  %p1952_p1 = scmp.lt.s32.totalorder %s20_s13, %s20_s13 }
   0x4   :  { %p1948_p0 = scmp.ne.s32.totalorder %s20_s13, %s1947_s14  ;;  %p1953_p2 = scmp.lt.s32.totalorder %s1947_s14, %s1947_s14 }
   0x6   :  { %p1954_p3 = por %p1953_p2, %p1952_p1 }
   0x8   :  { %p1955_p4 = pnand %p1954_p3, %p1948_p0 }
   0xa   :  { %1958 = shalt.err (!%p1955_p4)
}
   0xb   :  { %s1984_s15 = smov 128   ;;  %s1985_s16 = smov 8  }
   0xc   :  { %25 = dma.hbm_to_vmem [thread:$0]  %s2464_s2, 896, %s20_s13, [#allocation3], %s1984_s15, %s1984_s15, %s1985_s16  }
   0xd   :  { %1979 = dma.done.wait [#allocation3], 896  }
   0xe   :  { %1980 = vsyncadd [#allocation3], 4294966400  ;;  %v1860_v0 = vld [vmem:[%s2463_s1 + $0x98] sm:$0xff]   ;;  %vm147_vm0 = vcmask 130048   ;;  %v2024_v1 = vld [vmem:[%s2462_s0] sm:$0xff]   ;;  %v97_v13 = vlaneseq  ;;  %vm1988_vm1 = vmmov 0  }
   0xf   :  { %1671 = vmatprep.subr.bf16.mxu0 %v1860_v0  ;;  %v2029_v2 = vld [vmem:[%s2462_s0 + $0x8] sm:$0xff]   ;;  %1673 = vmatprep.mubr.msk.bf16.mxu0 %vm147_vm0, %v2024_v1  ;;  %v2036_v3 = vld [vmem:[%s2462_s0 + $0x10] sm:$0xff]   ;;  %v2045_v4 = vld [vmem:[%s2462_s0 + $0x18] sm:$0xff]   ;;  %s1989_s23 = smov 112   ;;  %vm842_vm2 = vcmask 523264   ;;  %vm1460_vm5 = vcmask 261120  }
  0x10   :  { %1672 = vmatpush3.bf16.msra.mxu0 %v1860_v0  ;;  %v2050_v5 = vld [vmem:[%s2462_s0 + $0x20] sm:$0xff]   ;;  %v2059_v6 = vld [vmem:[%s2462_s0 + $0x28] sm:$0xff]   ;;  %v2064_v7 = vld [vmem:[%s2462_s0 + $0x30] sm:$0xff]   ;;  %v2077_v16 = vshrl.u32 %v97_v13, 7  ;;  %vm1516_vm8 = vcmask 195584  }
  0x11   :  { %2487 = vst [vmem:[#allocation8_spill] sm:$0xff] %v2050_v5  ;;  %2488 = vst [vmem:[#allocation9_spill] sm:$0xff] %v2059_v6  ;;  %v2073_v8 = vld [vmem:[%s2462_s0 + $0x38] sm:$0xff]   ;;  %v2080_v20 = vld [vmem:[#allocation2 + $0x20] sm:$0xff]  ;;  %s1986_s0 = smov 16  }
  0x12   :  { %2489 = vst [vmem:[#allocation10_spill] sm:$0xff] %v2064_v7  ;;  %2490 = vst [vmem:[#allocation11_spill] sm:$0xff] %v2073_v8  ;;  %v99_v19 = vsub.s32 1, %v2077_v16  ;;  %v1869_v54 = vld [vmem:[%s2463_s1] sm:$0xff]  }
  0x13   :  { %1674 = vmatmul.mubr.msk.bf16.vlgmr.msra.gmra.mxu0 %vm147_vm0, %v2029_v2  ;;  %1705 = vmatprep.mubr.bf16.mxu1 %v1869_v54 }
  0x14   :  { %1677 = vmatprep.mubr.msk.bf16.mxu0 %vm147_vm0, %v2036_v3  ;;  %v100_v23 = vrot.slane %v2080_v20, %v99_v19 }
  0x1b   :  { %1678 = vmatmul.mubr.msk.bf16.gmra.mxu0 %vm147_vm0, %v2045_v4 }
  0x1c   :  { %1681 = vmatprep.mubr.msk.bf16.mxu0 %vm147_vm0, %v2050_v5 }
  0x23   :  { %1682 = vmatmul.mubr.msk.bf16.gmra.mxu0 %vm147_vm0, %v2059_v6 }
  0x24   :  { %1685 = vmatprep.mubr.msk.bf16.mxu0 %vm147_vm0, %v2064_v7 }
  0x2b   :  { %1686 = vmatmul.mubr.msk.bf16.gmra.mxu0 %vm147_vm0, %v2073_v8 }
  0xd3   :  { %v1675_v9 = vpop.f32.mrf.mxu0 }
  0xd4   :  { %v215_v52 = vadd.f32 %v1675_v9, %v100_v23 }
  0xd5   :  { %v206_v10 = vpop.f32.mrf.mxu0 }
  0xd6   :  { %v207_v44 = vadd.f32 %v206_v10, %v100_v23 }
  0xd7   :  { %v1676_v11 = vpop.f32.mrf.mxu0 }
  0xd8   :  { %v218_v50 = vadd.f32 %v1676_v11, %v100_v23 }
  0xd9   :  { %v209_v12 = vpop.f32.mrf.mxu0 }
  0xda   :  { %v210_v40 = vadd.f32 %v209_v12, %v100_v23  ;;  %v2113_v53 = vpack.c.bf16 %v218_v50, %v215_v52 }
  0xdb   :  { %v1679_v14 = vpop.f32.mrf.mxu0 }
  0xdc   :  { %v2101_v46 = vpack.c.bf16 %v210_v40, %v207_v44  ;;  %v231_v49 = vadd.f32 %v1679_v14, %v100_v23  ;;  %2496 = vst [vmem:[#allocation17_spill] sm:$0xff] %v2113_v53  ;;  %v2200_v40 = vsel %vm147_vm0, %v2036_v3, 0 }
  0xdd   :  { %v222_v15 = vpop.f32.mrf.mxu0 }
  0xde   :  { %v223_v36 = vadd.f32 %v222_v15, %v100_v23  ;;  %2494 = vst [vmem:[#allocation15_spill] sm:$0xff] %v2101_v46  ;;  %v1870_v15 = vld [vmem:[%s2463_s1 + $0x8] sm:$0xff]  }
  0xdf   :  { %v1680_v17 = vpop.f32.mrf.mxu0 }
  0xe0   :  { %v234_v47 = vadd.f32 %v1680_v17, %v100_v23  ;;  %v1871_v17 = vld [vmem:[%s2463_s1 + $0x10] sm:$0xff]  }
  0xe1   :  { %v225_v18 = vpop.f32.mrf.mxu0 }
  0xe2   :  { %v226_v33 = vadd.f32 %v225_v18, %v100_v23  ;;  %v2109_v51 = vpack.c.bf16 %v234_v47, %v231_v49  ;;  %v1872_v18 = vld [vmem:[%s2463_s1 + $0x18] sm:$0xff]  }
  0xe3   :  { %v1683_v21 = vpop.f32.mrf.mxu0 }
  0xe4   :  { %v247_v25 = vadd.f32 %v1683_v21, %v100_v23  ;;  %v2093_v41 = vpack.c.bf16 %v226_v33, %v223_v36  ;;  %v1873_v21 = vld [vmem:[%s2463_s1 + $0x20] sm:$0xff]   ;;  %v1884_v33 = vld [vmem:[%s2463_s1 + $0x78] sm:$0xff]   ;;  %v1886_v36 = vld [vmem:[%s2463_s1 + $0x88] sm:$0xff]  }
  0xe5   :  { %v238_v22 = vpop.f32.mrf.mxu0 }
  0xe6   :  { %v239_v31 = vadd.f32 %v238_v22, %v100_v23  ;;  %v1874_v22 = vld [vmem:[%s2463_s1 + $0x28] sm:$0xff]  }
  0xe7   :  { %v1684_v24 = vpop.f32.mrf.mxu0 }
  0xe8   :  { %v250_v26 = vadd.f32 %v1684_v24, %v100_v23  ;;  %v1876_v24 = vld [vmem:[%s2463_s1 + $0x38] sm:$0xff]  }
  0xe9   :  { %v241_v27 = vpop.f32.mrf.mxu0 }
  0xea   :  { %v2085_v28 = vpack.c.bf16 %v250_v26, %v247_v25  ;;  %v242_v29 = vadd.f32 %v241_v27, %v100_v23  ;;  %v1877_v25 = vld [vmem:[%s2463_s1 + $0x40] sm:$0xff]   ;;  %v1878_v26 = vld [vmem:[%s2463_s1 + $0x48] sm:$0xff]   ;;  %v1879_v27 = vld [vmem:[%s2463_s1 + $0x50] sm:$0xff]  }
  0xeb   :  { %v1687_v30 = vpop.f32.mrf.mxu0 }
  0xec   :  { %2491 = vst [vmem:[#allocation12_spill] sm:$0xff] %v2085_v28  ;;  %295 = vrot.lane.b32.xlu1 %v2085_v28, %s1986_s0  ;;  %v2089_v34 = vpack.c.bf16 %v242_v29, %v239_v31  ;;  %v263_v37 = vadd.f32 %v1687_v30, %v100_v23  ;;  %v1880_v29 = vld [vmem:[%s2463_s1 + $0x58] sm:$0xff]   ;;  %v1881_v30 = vld [vmem:[%s2463_s1 + $0x60] sm:$0xff]   ;;  %v1882_v31 = vld [vmem:[%s2463_s1 + $0x68] sm:$0xff]  }
  0xed   :  { %v254_v32 = vpop.f32.mrf.mxu0 }
  0xee   :  { %2492 = vst [vmem:[#allocation13_spill] sm:$0xff] %v2089_v34  ;;  %v255_v45 = vadd.f32 %v254_v32, %v100_v23  ;;  %v1883_v32 = vld [vmem:[%s2463_s1 + $0x70] sm:$0xff]  }
  0xef   :  { %v1688_v35 = vpop.f32.mrf.mxu0 }
  0xf0   :  { %v266_v38 = vadd.f32 %v1688_v35, %v100_v23  ;;  %293 = vrot.lane.b32.xlu1 %v2089_v34, %s1986_s0  ;;  %v1885_v35 = vld [vmem:[%s2463_s1 + $0x80] sm:$0xff]  }
  0xf1   :  { %v257_v39 = vpop.f32.mrf.mxu0 }
  0xf2   :  { %v2095_v42 = vpack.c.bf16 %v266_v38, %v263_v37  ;;  %v258_v43 = vadd.f32 %v257_v39, %v100_v23  ;;  %v1875_v23 = vld [vmem:[%s2463_s1 + $0x30] sm:$0xff]   ;;  %v2466_v38 = vmov 0.0   ;;  %v2193_v39 = vsel %vm147_vm0, %v2045_v4, 0 }
  0xf3   :  { %v1887_v37 = vld [vmem:[%s2463_s1 + $0x90] sm:$0xff]  }
  0xf4   :  { %2493 = vst [vmem:[#allocation14_spill] sm:$0xff] %v2095_v42  ;;  %299 = vrot.lane.b32.xlu0 %v2095_v42, %s1986_s0  ;;  %289 = vrot.lane.b32.xlu1 %v2093_v41, %s1986_s0  ;;  %v2103_v48 = vpack.c.bf16 %v258_v43, %v255_v45  ;;  %v2206_v43 = vsel %vm147_vm0, %v2029_v2, 0 }
  0xf5   :  { %1741 = vmatprep.subr.bf16.mxu0 %v1887_v37 }
  0xf6   :  { %2495 = vst [vmem:[#allocation16_spill] sm:$0xff] %v2103_v48  ;;  %1742 = vmatpush3.bf16.msra.mxu0 %v1887_v37 }
  0xf7   :  { %1747 = vmatprep.subr.bf16.mxu0 %v2466_v38 }
  0xf8   :  { %297 = vrot.lane.b32.xlu0 %v2103_v48, %s1986_s0  ;;  %285 = vrot.lane.b32.xlu1 %v2101_v46, %s1986_s0 }
  0xfc   :  { %291 = vrot.lane.b32.xlu0 %v2109_v51, %s1986_s0 }
 0x100   :  { %287 = vrot.lane.b32.xlu0 %v2113_v53, %s1986_s0 }
 0x15e   :  { %v296_v57 = vpop.permute.xlu1 %295 }
 0x15f   :  { %v317_v60 = vsel %vm147_vm0, %v2059_v6, %v296_v57 }
 0x162   :  { %v294_v61 = vpop.permute.xlu1 %293 }
 0x163   :  { %v314_v62 = vsel %vm147_vm0, %v2050_v5, %v294_v61 }
 0x166   :  { %v300_v55 = vpop.permute.xlu0 %299  ;;  %v290_v9 = vpop.permute.xlu1 %289 }
 0x167   :  { %v323_v56 = vsel %vm147_vm0, %v2073_v8, %v300_v55  ;;  %v308_v10 = vsel %vm147_vm0, %v2036_v3, %v290_v9 }
 0x168   :  { %1689 = vmatprep.subr.bf16.mxu1 %v323_v56 }
 0x169   :  { %1690 = vmatpush3.bf16.msra.mxu1 %v323_v56 }
 0x16a   :  { %v298_v58 = vpop.permute.xlu0 %297  ;;  %v286_v13 = vpop.permute.xlu1 %285 }
 0x16b   :  { %v320_v59 = vsel %vm147_vm0, %v2064_v7, %v298_v58  ;;  %v302_v14 = vsel %vm147_vm0, %v2024_v1, %v286_v13  ;;  %v2473_v13 = vsub.s32 2, %v2077_v16 }
 0x16c   :  { %1691 = vmatprep.subr.bf16.mxu1 %v320_v59 }
 0x16d   :  { %1692 = vmatpush3.bf16.msra.mxu1 %v320_v59 }
 0x16e   :  { %1693 = vmatprep.subr.bf16.mxu1 %v317_v60  ;;  %v292_v63 = vpop.permute.xlu0 %291 }
 0x16f   :  { %v311_v0 = vsel %vm147_vm0, %v2045_v4, %v292_v63 }
 0x171   :  { %1694 = vmatpush3.bf16.msra.mxu1 %v317_v60 }
 0x172   :  { %1695 = vmatprep.subr.bf16.mxu1 %v314_v62  ;;  %v288_v11 = vpop.permute.xlu0 %287 }
 0x173   :  { %v305_v12 = vsel %vm147_vm0, %v2029_v2, %v288_v11 }
 0x175   :  { %1696 = vmatpush3.bf16.msra.mxu1 %v314_v62 }
 0x176   :  { %1697 = vmatprep.subr.bf16.mxu1 %v311_v0 }
 0x179   :  { %1698 = vmatpush3.bf16.msra.mxu1 %v311_v0 }
 0x17a   :  { %1699 = vmatprep.subr.bf16.mxu1 %v308_v10 }
 0x17d   :  { %1700 = vmatpush3.bf16.msra.mxu1 %v308_v10 }
 0x17e   :  { %1701 = vmatprep.subr.bf16.mxu1 %v305_v12 }
 0x181   :  { %1702 = vmatpush3.bf16.msra.mxu1 %v305_v12  ;;  %v2470_v12 = vsub.s32 0, %v2077_v16 }
 0x182   :  { %1703 = vmatprep.subr.bf16.mxu1 %v302_v14 }
 0x185   :  { %1704 = vmatpush3.bf16.msra.mxu1 %v302_v14 }
 0x186   :  { %1771 = vmatprep.subr.bf16.mxu1 %v2466_v38 }
 0x188   :  { %1706 = vmatmul.mubr.bf16.vlgmr.msra.gmra.mxu1 %v1870_v15  ;;  %v95_v15 = vld [vmem:[#allocation2 + $0x28] sm:$0xff] }
 0x189   :  { %1709 = vmatprep.mubr.bf16.mxu1 %v1871_v17  ;;  %1772 = vmatpush3.bf16.xpose.msra.mxu1 %v2193_v39  ;;  %v625_v17 = vrot.slane %v95_v15, %v99_v19 }
 0x18a   :  { %1773 = vmatprep.subr.bf16.mxu1 %v2466_v38 }
 0x190   :  { %1710 = vmatmul.mubr.bf16.gmra.mxu1 %v1872_v18  ;;  %v2484_v18 = vsub.s32 3, %v2077_v16 }
 0x191   :  { %1713 = vmatprep.mubr.bf16.mxu1 %v1873_v21  ;;  %1774 = vmatpush3.bf16.xpose.msra.mxu1 %v2200_v40  ;;  %v660_v21 = vsub.s32 4, %v2077_v16 }
 0x192   :  { %1775 = vmatprep.subr.bf16.mxu1 %v2466_v38 }
 0x198   :  { %1714 = vmatmul.mubr.bf16.gmra.mxu1 %v1874_v22  ;;  %v672_v22 = vsub.s32 5, %v2077_v16 }
 0x199   :  { %1717 = vmatprep.mubr.bf16.mxu1 %v1875_v23  ;;  %1776 = vmatpush3.bf16.xpose.msra.mxu1 %v2206_v43 }
 0x19a   :  { %1777 = vmatprep.subr.bf16.mxu1 %v2466_v38 }
 0x1a0   :  { %1718 = vmatmul.mubr.bf16.gmra.mxu1 %v1876_v24  ;;  %v684_v24 = vsub.s32 6, %v2077_v16 }
 0x1a1   :  { %1721 = vmatprep.mubr.bf16.mxu1 %v1877_v25  ;;  %v613_v25 = vrot.slane %v95_v15, %v2470_v12 }
 0x1a2   :  { %v685_v5 = vrot.slane %v95_v15, %v684_v24 }
 0x1a8   :  { %1722 = vmatmul.mubr.bf16.gmra.mxu1 %v1878_v26  ;;  %v637_v26 = vrot.slane %v95_v15, %v2473_v13 }
 0x1a9   :  { %1725 = vmatprep.mubr.bf16.mxu1 %v1879_v27 }
 0x1b0   :  { %1726 = vmatmul.mubr.bf16.gmra.mxu1 %v1880_v29  ;;  %v696_v29 = vsub.s32 7, %v2077_v16 }
 0x1b1   :  { %1729 = vmatprep.mubr.bf16.mxu1 %v1881_v30 }
 0x1b2   :  { %v697_v13 = vrot.slane %v95_v15, %v696_v29 }
 0x1b8   :  { %1730 = vmatmul.mubr.bf16.gmra.mxu1 %v1882_v31  ;;  %v649_v31 = vrot.slane %v95_v15, %v2484_v18 }
 0x1b9   :  { %1733 = vmatprep.mubr.bf16.mxu1 %v1883_v32  ;;  %v661_v32 = vrot.slane %v95_v15, %v660_v21 }
 0x1c0   :  { %1734 = vmatmul.mubr.bf16.gmra.mxu1 %v1884_v33  ;;  %v673_v33 = vrot.slane %v95_v15, %v672_v22 }
 0x1c1   :  { %1737 = vmatprep.mubr.bf16.mxu1 %v1885_v35 }
 0x1c8   :  { %1738 = vmatmul.mubr.bf16.gmra.mxu1 %v1886_v36 }
 0x248   :  { %v1707_v4 = vpop.f32.mrf.mxu1 }
 0x249   :  { %v616_v6 = vmul.f32 %v1707_v4, %v613_v25 }
 0x24a   :  { %v467_v44 = vpop.f32.mrf.mxu1 }
 0x24b   :  { %v614_v36 = vmul.f32 %v613_v25, %v467_v44 }
 0x24c   :  { %v1708_v45 = vpop.f32.mrf.mxu1 }
 0x24d   :  { %v617_v34 = vmul.f32 %v1708_v45, %v613_v25 }
 0x24e   :  { %v470_v47 = vpop.f32.mrf.mxu1 }
 0x250   :  { %v1711_v49 = vpop.f32.mrf.mxu1 }
 0x251   :  { %v628_v19 = vmul.f32 %v1711_v49, %v625_v17  ;;  %v615_v49 = vmul.f32 %v613_v25, %v470_v47 }
 0x252   :  { %v483_v50 = vpop.f32.mrf.mxu1 }
 0x253   :  { %v626_v30 = vmul.f32 %v625_v17, %v483_v50  ;;  %v632_v42 = vadd.f32 %v628_v19, %v616_v6 }
 0x254   :  { %v1712_v3 = vpop.f32.mrf.mxu1 }
 0x255   :  { %v629_v37 = vmul.f32 %v1712_v3, %v625_v17  ;;  %v630_v28 = vadd.f32 %v626_v30, %v614_v36 }
 0x256   :  { %v486_v52 = vpop.f32.mrf.mxu1 }
 0x257   :  { %v627_v12 = vmul.f32 %v625_v17, %v486_v52  ;;  %v633_v22 = vadd.f32 %v629_v37, %v617_v34 }
 0x258   :  { %v1715_v54 = vpop.f32.mrf.mxu1 }
 0x259   :  { %v640_v7 = vmul.f32 %v1715_v54, %v637_v26 }
 0x25a   :  { %v499_v55 = vpop.f32.mrf.mxu1 }
 0x25b   :  { %v638_v38 = vmul.f32 %v637_v26, %v499_v55  ;;  %v631_v55 = vadd.f32 %v627_v12, %v615_v49  ;;  %v644_v4 = vadd.f32 %v640_v7, %v632_v42 }
 0x25c   :  { %v1716_v56 = vpop.f32.mrf.mxu1 }
 0x25d   :  { %v641_v48 = vmul.f32 %v1716_v56, %v637_v26  ;;  %v642_v53 = vadd.f32 %v638_v38, %v630_v28 }
 0x25e   :  { %v502_v57 = vpop.f32.mrf.mxu1 }
 0x25f   :  { %v639_v46 = vmul.f32 %v637_v26, %v502_v57  ;;  %v645_v45 = vadd.f32 %v641_v48, %v633_v22 }
 0x260   :  { %v1719_v58 = vpop.f32.mrf.mxu1 }
 0x261   :  { %v652_v18 = vmul.f32 %v1719_v58, %v649_v31  ;;  %v643_v6 = vadd.f32 %v639_v46, %v631_v55 }
 0x262   :  { %v515_v59 = vpop.f32.mrf.mxu1 }
 0x263   :  { %v650_v50 = vmul.f32 %v649_v31, %v515_v59  ;;  %v656_v57 = vadd.f32 %v652_v18, %v644_v4 }
 0x264   :  { %v1720_v2 = vpop.f32.mrf.mxu1 }
 0x265   :  { %v653_v44 = vmul.f32 %v1720_v2, %v649_v31  ;;  %v654_v17 = vadd.f32 %v650_v50, %v642_v53 }
 0x266   :  { %v518_v60 = vpop.f32.mrf.mxu1 }
 0x267   :  { %v651_v52 = vmul.f32 %v649_v31, %v518_v60  ;;  %v657_v38 = vadd.f32 %v653_v44, %v645_v45 }
 0x268   :  { %v2210_v61 = vpop.f32.mrf.mxu1 }
 0x269   :  { %v664_v54 = vmul.f32 %v2210_v61, %v661_v32  ;;  %v655_v7 = vadd.f32 %v651_v52, %v643_v6  ;;  %v2497_v52 = vsub.s32 2, %v2077_v16 }
 0x26a   :  { %v2212_v62 = vpop.f32.mrf.mxu1 }
 0x26b   :  { %v662_v3 = vmul.f32 %v661_v32, %v2212_v62  ;;  %v668_v42 = vadd.f32 %v664_v54, %v656_v57 }
 0x26c   :  { %v2214_v63 = vpop.f32.mrf.mxu1 }
 0x26d   :  { %v665_v56 = vmul.f32 %v2214_v63, %v661_v32  ;;  %v666_v59 = vadd.f32 %v662_v3, %v654_v17 }
 0x26e   :  { %v2216_v0 = vpop.f32.mrf.mxu1 }
 0x26f   :  { %v663_v58 = vmul.f32 %v661_v32, %v2216_v0  ;;  %v669_v48 = vadd.f32 %v665_v56, %v657_v38 }
 0x270   :  { %v1727_v9 = vpop.f32.mrf.mxu1 }
 0x271   :  { %v676_v34 = vmul.f32 %v1727_v9, %v673_v33  ;;  %v667_v46 = vadd.f32 %v663_v58, %v655_v7 }
 0x272   :  { %v547_v10 = vpop.f32.mrf.mxu1 }
 0x273   :  { %v674_v47 = vmul.f32 %v673_v33, %v547_v10  ;;  %v1573_v10 = vld [vmem:[#allocation2 + $0x30] ss:$0 sm:$0xff]  ;;  %v680_v18 = vadd.f32 %v676_v34, %v668_v42 }
 0x274   :  { %v1728_v11 = vpop.f32.mrf.mxu1 }
 0x275   :  { %v677_v2 = vmul.f32 %v1728_v11, %v673_v33  ;;  %v678_v53 = vadd.f32 %v674_v47, %v666_v59 }
 0x276   :  { %v550_v14 = vpop.f32.mrf.mxu1 }
 0x277   :  { %v675_v60 = vmul.f32 %v673_v33, %v550_v14  ;;  %v681_v9 = vadd.f32 %v677_v2, %v669_v48  ;;  %v2498_v2 = vmov 0.0  }
 0x278   :  { %v1731_v23 = vpop.f32.mrf.mxu1  ;;  %1779 = vmatprep.mubr.msk.bf16.mxu1 %vm1988_vm1, %v2498_v2 }
 0x279   :  { %v688_v24 = vmul.f32 %v1731_v23, %v685_v5  ;;  %v679_v11 = vadd.f32 %v675_v60, %v667_v46  ;;  %v2300_v46 = vld [vmem:[#allocation2] sm:$0xff] }
 0x27a   :  { %v563_v27 = vpop.f32.mrf.mxu1 }
 0x27b   :  { %v686_v12 = vmul.f32 %v685_v5, %v563_v27  ;;  %v692_v27 = vadd.f32 %v688_v24, %v680_v18 }
 0x27c   :  { %v1732_v35 = vpop.f32.mrf.mxu1 }
 0x27d   :  { %v689_v26 = vmul.f32 %v1732_v35, %v685_v5  ;;  %v690_v31 = vadd.f32 %v686_v12, %v678_v53  ;;  %v2502_v53 = vld [vmem:[#allocation14_spill] sm:$0xff] }
 0x27e   :  { %v566_v8 = vpop.f32.mrf.mxu1 }
 0x27f   :  { %v687_v32 = vmul.f32 %v685_v5, %v566_v8  ;;  %v693_v14 = vadd.f32 %v689_v26, %v681_v9  ;;  %v721_v5 = vrot.slane %v2080_v20, %v2497_v52  ;;  %v2503_v26 = vld [vmem:[#allocation16_spill] sm:$0xff]  ;;  %v2303_v9 = vld [vmem:[#allocation2 + $0x8] sm:$0xff] }
 0x280   :  { %v1735_v21 = vpop.f32.mrf.mxu1 }
 0x281   :  { %v700_v30 = vmul.f32 %v1735_v21, %v697_v13  ;;  %v691_v44 = vadd.f32 %v687_v32, %v679_v11 }
 0x282   :  { %v579_v15 = vpop.f32.mrf.mxu1 }
 0x283   :  { %v698_v29 = vmul.f32 %v697_v13, %v579_v15  ;;  %v704_v22 = vadd.f32 %v700_v30, %v692_v27 }
 0x284   :  { %v1736_v28 = vpop.f32.mrf.mxu1 }
 0x285   :  { %v701_v36 = vmul.f32 %v1736_v28, %v697_v13  ;;  %v702_v23 = vadd.f32 %v698_v29, %v690_v31  ;;  %v2504_v29 = vld [vmem:[#allocation12_spill] sm:$0xff] }
 0x286   :  { %v582_v25 = vpop.f32.mrf.mxu1 }
 0x287   :  { %v699_v33 = vmul.f32 %v697_v13, %v582_v25  ;;  %v705_v3 = vadd.f32 %v701_v36, %v693_v14  ;;  %v2501_v25 = vld [vmem:[#allocation15_spill] sm:$0xff] }
 0x288   :  { %v1739_v19 = vpop.f32.mrf.mxu1 }
 0x289   :  { %v712_v37 = vmul.f32 %v1739_v19, %v1573_v10  ;;  %v703_v54 = vadd.f32 %v699_v33, %v691_v44  ;;  %v2311_v33 = vld [vmem:[#allocation2 + $0x18] sm:$0xff] }
 0x28a   :  { %v595_v50 = vpop.f32.mrf.mxu1 }
 0x28b   :  { %v710_v49 = vmul.f32 %v1573_v10, %v595_v50  ;;  %v716_v21 = vadd.f32 %v712_v37, %v704_v22  ;;  %v2308_v37 = vld [vmem:[#allocation2 + $0x10] sm:$0xff] }
 0x28c   :  { %v1740_v35 = vpop.f32.mrf.mxu1 }
 0x28d   :  { %v714_v55 = vadd.f32 %v710_v49, %v702_v23  ;;  %v713_v4 = vmul.f32 %v1740_v35, %v1573_v10  ;;  %v2244_v47 = vadd.f32 %v721_v5, %v716_v21 }
 0x28e   :  { %v598_v8 = vpop.f32.mrf.mxu1 }
 0x28f   :  { %v717_v15 = vadd.f32 %v713_v4, %v705_v3  ;;  %v711_v45 = vmul.f32 %v1573_v10, %v598_v8  ;;  %v2240_v17 = vadd.f32 %v721_v5, %v714_v55  ;;  %v728_v28 = vadd.f32 %v2210_v61, %v2244_v47  ;;  %v2505_v10 = vld [vmem:[#allocation13_spill] sm:$0xff] }
 0x290   :  { %v149_v61 = vsel %vm147_vm0, %v2024_v1, 0 }
 0x291   :  { %v2242_v56 = vadd.f32 %v721_v5, %v717_v15  ;;  %v715_v13 = vadd.f32 %v711_v45, %v703_v54  ;;  %v726_v58 = vadd.f32 %v2240_v17, %v2212_v62  ;;  %1778 = vmatpush3.bf16.xpose.msra.mxu1 %v149_v61 }
 0x292   :  { %1807 = vmatprep.subr.bf16.mxu1 %v2498_v2 }
 0x293   :  { %v2246_v6 = vadd.f32 %v721_v5, %v715_v13  ;;  %v729_v57 = vadd.f32 %v2214_v63, %v2242_v56 }
 0x295   :  { %v727_v34 = vadd.f32 %v2246_v6, %v2216_v0  ;;  %v731_v59 = vpack.c.bf16 %v729_v57, %v728_v28 }
 0x297   :  { %v730_v38 = vpack.c.bf16 %v727_v34, %v726_v58 }
 0x299   :  { %1743 = vmatprep.mubr.msk.bf16.mxu0 %vm147_vm0, %v730_v38 }
 0x29a   :  { %1744 = vmatmul.mubr.msk.bf16.vlgmr.msra.gmra.mxu0 %vm147_vm0, %v731_v59 }
 0x29b   :  { %1748 = vmatpush3.bf16.xpose.msra.mxu0 %v2193_v39  ;;  %1755 = vmatprep.mubr.msk.bf16.mxu0 %vm1988_vm1, %v2498_v2  ;;  %v2499_v39 = vsub.s32 0, %v2077_v16 }
 0x29c   :  { %1749 = vmatprep.subr.bf16.mxu0 %v2498_v2 }
 0x2a3   :  { %1750 = vmatpush3.bf16.xpose.msra.mxu0 %v2200_v40  ;;  %v735_v40 = vrot.slane %v2080_v20, %v2499_v39  ;;  %v2500_v20 = vld [vmem:[#allocation17_spill] sm:$0xff] }
 0x2a4   :  { %1751 = vmatprep.subr.bf16.mxu0 %v2498_v2 }
 0x2ab   :  { %1752 = vmatpush3.bf16.xpose.msra.mxu0 %v2206_v43 }
 0x2ac   :  { %1753 = vmatprep.subr.bf16.mxu0 %v2498_v2 }
 0x2b3   :  { %1754 = vmatpush3.bf16.xpose.msra.mxu0 %v149_v61 }
 0x2b4   :  { %1759 = vmatprep.subr.bf16.mxu0 %v2498_v2 }
 0x35a   :  { %v1745_v43 = vpop.f32.mrf.mxu0 }
 0x35b   :  { %v791_v62 = vadd.f32 %v1745_v43, %v735_v40 }
 0x35c   :  { %v782_v1 = vpop.f32.mrf.mxu0 }
 0x35d   :  { %v783_v7 = vadd.f32 %v782_v1, %v735_v40 }
 0x35e   :  { %v1746_v63 = vpop.f32.mrf.mxu0 }
 0x35f   :  { %v794_v0 = vadd.f32 %v1746_v63, %v735_v40 }
 0x360   :  { %v785_v12 = vpop.f32.mrf.mxu0 }
 0x361   :  { %v2275_v42 = vpack.c.bf16 %v794_v0, %v791_v62  ;;  %v786_v60 = vadd.f32 %v785_v12, %v735_v40 }
 0x363   :  { %v797_v24 = vpack.c.bf16 %v786_v60, %v783_v7 }
 0x365   :  { %917 = vrot.lane.b32.xlu0 %v797_v24, %s1989_s23  ;;  %1756 = vmatmul.mubr.msk.bf16.vlgmr.msra.gmra.mxu0 %vm147_vm0, %v797_v24 }
 0x366   :  { %1760 = vmatpush3.bf16.msra.mxu0 %v2109_v51  ;;  %1767 = vmatprep.mubr.msk.bf16.mxu0 %vm1988_vm1, %v2498_v2 }
 0x367   :  { %1761 = vmatprep.subr.bf16.mxu0 %v2498_v2 }
 0x36a   :  { %1762 = vmatpush3.bf16.msra.mxu0 %v2093_v41 }
 0x36b   :  { %1763 = vmatprep.subr.bf16.mxu0 %v2498_v2 }
 0x36e   :  { %1764 = vmatpush3.bf16.msra.mxu0 %v2500_v20 }
 0x36f   :  { %1765 = vmatprep.subr.bf16.mxu0 %v2498_v2 }
 0x372   :  { %1766 = vmatpush3.bf16.msra.mxu0 %v2501_v25 }
 0x373   :  { %1783 = vmatprep.subr.bf16.mxu0 %v2498_v2 }
 0x3d7   :  { %v918_v48 = vpop.permute.xlu0 %917 }
 0x3d8   :  { %1780 = vmatmul.mubr.msk.bf16.vlgmr.msra.gmra.mxu1 %vm147_vm0, %v918_v48 }
 0x3d9   :  { %1808 = vmatpush3.bf16.msra.mxu1 %v2502_v53  ;;  %1815 = vmatprep.mubr.msk.bf16.mxu1 %vm1988_vm1, %v2498_v2 }
 0x3da   :  { %1809 = vmatprep.subr.bf16.mxu1 %v2498_v2 }
 0x3dd   :  { %1810 = vmatpush3.bf16.msra.mxu1 %v2503_v26 }
 0x3de   :  { %1811 = vmatprep.subr.bf16.mxu1 %v2498_v2 }
 0x3e1   :  { %1812 = vmatpush3.bf16.msra.mxu1 %v2504_v29 }
 0x3e2   :  { %1813 = vmatprep.subr.bf16.mxu1 %v2498_v2 }
 0x3e5   :  { %1814 = vmatpush3.bf16.msra.mxu1 %v2505_v10 }
 0x3e6   :  { %1819 = vmatprep.subr.bf16.mxu1 %v2498_v2 }
 0x425   :  { %v835_v18 = vpop.f32.mrf.mxu0 }
 0x426   :  { %v836_v30 = vadd.f32 %v835_v18, %v2300_v46 }
 0x427   :  { %v1757_v19 = vpop.f32.mrf.mxu0 }
 0x428   :  { %v843_v31 = vsel %vm842_vm2, %v836_v30, -inf }
 0x429   :  { %844 = vmax.xlane.f32.xlu1 %v843_v31  ;;  %v838_v32 = vpop.f32.mrf.mxu0 }
 0x42a   :  { %v839_v36 = vadd.f32 %v838_v32, %v2303_v9 }
 0x42b   :  { %v1758_v11 = vpop.f32.mrf.mxu0 }
 0x42c   :  { %v846_v27 = vsel %vm842_vm2, %v839_v36, -inf }
 0x42d   :  { %847 = vmax.xlane.f32.xlu0 %v846_v27 }
 0x498   :  { %v956_v50 = vpop.f32.mrf.mxu1 }
 0x499   :  { %v957_v14 = vadd.f32 %v956_v50, %v2308_v37 }
 0x49a   :  { %v1781_v23 = vpop.f32.mrf.mxu1 }
 0x49b   :  { %v963_v49 = vsel %vm842_vm2, %v957_v14, -inf }
 0x49c   :  { %v959_v22 = vpop.f32.mrf.mxu1  ;;  %964 = vmax.xlane.f32.xlu0 %v963_v49 }
 0x49d   :  { %v960_v35 = vadd.f32 %v959_v22, %v2311_v33 }
 0x49e   :  { %v1782_v44 = vpop.f32.mrf.mxu1 }
 0x49f   :  { %v966_v3 = vsel %vm842_vm2, %v960_v35, -inf }
 0x4a0   :  { %967 = vmax.xlane.f32.xlu1 %v966_v3 }
 0x4b2   :  { %v845_v55 = vpop.xlane.xlu1 %844 }
 0x4b3   :  { %v849_v4 = vsub.f32 %v836_v30, %v845_v55 }
 0x4b5   :  { %v851_v21 = vmul.f32 1.442695, %v849_v4  ;;  %v2506_v4 = vld [vmem:[#allocation11_spill] sm:$0xff] }
 0x4b6   :  { %v848_v52 = vpop.xlane.xlu0 %847 }
 0x4b7   :  { %1890 = vpow2.f32 %v851_v21  ;;  %v850_v5 = vsub.f32 %v839_v36, %v848_v52  ;;  %v2337_v21 = vsel %vm147_vm0, %v2506_v4, 0  ;;  %v2507_v52 = vld [vmem:[#allocation10_spill] sm:$0xff] }
 0x4b9   :  { %v853_v8 = vmul.f32 1.442695, %v850_v5  ;;  %v2346_v5 = vsel %vm147_vm0, %v2507_v52, 0 }
 0x4bb   :  { %1892 = vpow2.f32 %v853_v8  ;;  %v2508_v8 = vld [vmem:[#allocation9_spill] sm:$0xff] }
 0x4c4   :  { %v1891_v54 = vpop.eup %1890 }
 0x4c5   :  { %v855_v15 = vsel %vm842_vm2, %v1891_v54, 0.0 }
 0x4c6   :  { %856 = vadd.xlane.f32.xlu0 %v855_v15  ;;  %v2509_v15 = vld [vmem:[#allocation8_spill] sm:$0xff] }
 0x4c8   :  { %v1893_v45 = vpop.eup %1892 }
 0x4c9   :  { %v858_v13 = vsel %vm842_vm2, %v1893_v45, 0.0 }
 0x4ca   :  { %859 = vadd.xlane.f32.xlu1 %v858_v13 }
 0x4db   :  { %996 = vrot.lane.b32.xlu1 %v2093_v41, %s1989_s23 }
 0x525   :  { %v965_v57 = vpop.xlane.xlu0 %964 }
 0x526   :  { %v969_v58 = vsub.f32 %v957_v14, %v965_v57 }
 0x528   :  { %v971_v34 = vmul.f32 1.442695, %v969_v58 }
 0x529   :  { %v968_v28 = vpop.xlane.xlu1 %967 }
 0x52a   :  { %1894 = vpow2.f32 %v971_v34  ;;  %v970_v38 = vsub.f32 %v960_v35, %v968_v28 }
 0x52c   :  { %v973_v59 = vmul.f32 1.442695, %v970_v38 }
 0x52e   :  { %1896 = vpow2.f32 %v973_v59 }
 0x537   :  { %v1895_v61 = vpop.eup %1894 }
 0x538   :  { %v975_v39 = vsel %vm842_vm2, %v1895_v61, 0.0 }
 0x539   :  { %976 = vadd.xlane.f32.xlu0 %v975_v39 }
 0x53b   :  { %v1897_v40 = vpop.eup %1896 }
 0x53c   :  { %v978_v43 = vsel %vm842_vm2, %v1897_v40, 0.0 }
 0x53d   :  { %979 = vadd.xlane.f32.xlu1 %v978_v43 }
 0x54e   :  { %994 = vrot.lane.b32.xlu1 %v2500_v20, %s1989_s23 }
 0x54f   :  { %998 = vrot.lane.b32.xlu0 %v2109_v51, %s1989_s23  ;;  %v857_v41 = vpop.xlane.xlu0 %856 }
 0x550   :  { %1898 = vrcp.f32 %v857_v41 }
 0x553   :  { %v860_v62 = vpop.xlane.xlu1 %859  ;;  %992 = vrot.lane.b32.xlu0 %v2501_v25, %s1989_s23 }
 0x554   :  { %1900 = vrcp.f32 %v860_v62 }
 0x557   :  { %v997_v51 = vpop.permute.xlu1 %996 }
 0x55d   :  { %v1899_v1 = vpop.eup %1898 }
 0x55e   :  { %v863_v63 = vmul.f32 %v1899_v1, %v857_v41 }
 0x560   :  { %v865_v0 = vsub.f32 2.0, %v863_v63 }
 0x561   :  { %v1901_v12 = vpop.eup %1900 }
 0x562   :  { %v864_v7 = vmul.f32 %v1901_v12, %v860_v62  ;;  %v867_v60 = vmul.f32 %v1899_v1, %v865_v0 }
 0x564   :  { %v866_v24 = vsub.f32 2.0, %v864_v7  ;;  %v869_v18 = vmul.f32 %v1891_v54, %v867_v60  ;;  %v2352_v54 = vsel %vm147_vm0, %v2508_v8, 0 }
 0x566   :  { %v868_v48 = vmul.f32 %v1901_v12, %v866_v24 }
 0x568   :  { %v870_v20 = vmul.f32 %v1893_v45, %v868_v48  ;;  %v2358_v45 = vsel %vm147_vm0, %v2509_v15, 0 }
 0x56a   :  { %v871_v30 = vpack.c.bf16 %v870_v20, %v869_v18 }
 0x56c   :  { %1768 = vmatmul.mubr.msk.bf16.vlgmr.msra.gmra.mxu0 %vm842_vm2, %v871_v30 }
 0x56d   :  { %1791 = vmatprep.mubr.msk.bf16.mxu0 %vm1988_vm1, %v2498_v2 }
 0x5c2   :  { %v977_v19 = vpop.xlane.xlu0 %976 }
 0x5c3   :  { %1902 = vrcp.f32 %v977_v19 }
 0x5c6   :  { %v980_v25 = vpop.xlane.xlu1 %979  ;;  %v999_v31 = vpop.permute.xlu0 %998 }
 0x5c7   :  { %1904 = vrcp.f32 %v980_v25  ;;  %1784 = vmatpush3.bf16.msra.mxu0 %v999_v31 }
 0x5c8   :  { %1785 = vmatprep.subr.bf16.mxu0 %v2498_v2 }
 0x5ca   :  { %v995_v32 = vpop.permute.xlu1 %994  ;;  %v993_v27 = vpop.permute.xlu0 %992 }
 0x5cb   :  { %1786 = vmatpush3.bf16.msra.mxu0 %v997_v51 }
 0x5cc   :  { %1787 = vmatprep.subr.bf16.mxu0 %v2498_v2 }
 0x5cf   :  { %1788 = vmatpush3.bf16.msra.mxu0 %v995_v32 }
 0x5d0   :  { %v1903_v36 = vpop.eup %1902  ;;  %1789 = vmatprep.subr.bf16.mxu0 %v2498_v2 }
 0x5d1   :  { %v983_v11 = vmul.f32 %v1903_v36, %v977_v19 }
 0x5d3   :  { %v985_v50 = vsub.f32 2.0, %v983_v11  ;;  %1790 = vmatpush3.bf16.msra.mxu0 %v993_v27 }
 0x5d4   :  { %v1905_v14 = vpop.eup %1904  ;;  %1795 = vmatprep.subr.bf16.mxu0 %v2498_v2 }
 0x5d5   :  { %v984_v23 = vmul.f32 %v1905_v14, %v980_v25  ;;  %v987_v49 = vmul.f32 %v1903_v36, %v985_v50 }
 0x5d7   :  { %v986_v22 = vsub.f32 2.0, %v984_v23  ;;  %v989_v44 = vmul.f32 %v1895_v61, %v987_v49 }
 0x5d9   :  { %v988_v35 = vmul.f32 %v1905_v14, %v986_v22 }
 0x5db   :  { %v990_v3 = vmul.f32 %v1897_v40, %v988_v35 }
 0x5dd   :  { %v991_v55 = vpack.c.bf16 %v990_v3, %v989_v44 }
 0x5df   :  { %1792 = vmatmul.mubr.msk.bf16.vlgmr.msra.gmra.mxu0 %vm842_vm2, %v991_v55 }
 0x5e0   :  { %1796 = vmatpush3.bf16.xpose.msra.mxu0 %v2337_v21  ;;  %1803 = vmatprep.mubr.msk.bf16.mxu0 %vm1988_vm1, %v2498_v2 }
 0x5e1   :  { %1797 = vmatprep.subr.bf16.mxu0 %v2498_v2 }
 0x5e8   :  { %1798 = vmatpush3.bf16.xpose.msra.mxu0 %v2346_v5 }
 0x5e9   :  { %1799 = vmatprep.subr.bf16.mxu0 %v2498_v2 }
 0x5f0   :  { %1800 = vmatpush3.bf16.xpose.msra.mxu0 %v2352_v54 }
 0x5f1   :  { %1801 = vmatprep.subr.bf16.mxu0 %v2498_v2 }
 0x5f8   :  { %1802 = vmatpush3.bf16.xpose.msra.mxu0 %v2358_v45 }
 0x5f9   :  { %1831 = vmatprep.subr.bf16.mxu0 %v2498_v2 }
 0x5ff   :  { %1804 = vmatmul.mubr.msk.bf16.vlgmr.msra.gmra.mxu0 %vm147_vm0, %v2275_v42 }
 0x600   :  { %1839 = vmatprep.mubr.msk.bf16.mxu0 %vm1988_vm1, %v2498_v2 }
 0x62c   :  { %v2366_v13 = vpop.f32.mrf.mxu0 }
 0x62e   :  { %v1769_v57 = vpop.f32.mrf.mxu0 }
 0x630   :  { %v2368_v58 = vpop.f32.mrf.mxu0 }
 0x632   :  { %v1770_v34 = vpop.f32.mrf.mxu0 }
 0x69f   :  { %v1041_v28 = vpop.f32.mrf.mxu0 }
 0x6a1   :  { %v1793_v38 = vpop.f32.mrf.mxu0 }
 0x6a3   :  { %v2370_v59 = vpop.f32.mrf.mxu0 }
 0x6a5   :  { %v1794_v61 = vpop.f32.mrf.mxu0 }
 0x6bf   :  { %v1158_v39 = vpop.f32.mrf.mxu0 }
 0x6c0   :  { %v1159_v40 = vadd.f32 %v1158_v39, %v2300_v46 }
 0x6c1   :  { %v1805_v43 = vpop.f32.mrf.mxu0 }
 0x6c2   :  { %v1165_v41 = vsel %vm842_vm2, %v1159_v40, -inf }
 0x6c3   :  { %1166 = vmax.xlane.f32.xlu1 %v1165_v41  ;;  %v1161_v62 = vpop.f32.mrf.mxu0 }
 0x6c4   :  { %v1162_v1 = vadd.f32 %v1161_v62, %v2303_v9 }
 0x6c5   :  { %v1806_v63 = vpop.f32.mrf.mxu0 }
 0x6c6   :  { %v1168_v0 = vsel %vm842_vm2, %v1162_v1, -inf }
 0x6c7   :  { %1169 = vmax.xlane.f32.xlu0 %v1168_v0 }
 0x74c   :  { %v1167_v12 = vpop.xlane.xlu1 %1166 }
 0x74d   :  { %v1171_v7 = vsub.f32 %v1159_v40, %v1167_v12 }
 0x74f   :  { %v1173_v60 = vmul.f32 1.442695, %v1171_v7 }
 0x750   :  { %v1170_v24 = vpop.xlane.xlu0 %1169 }
 0x751   :  { %1906 = vpow2.f32 %v1173_v60  ;;  %v1172_v48 = vsub.f32 %v1162_v1, %v1170_v24 }
 0x753   :  { %v1175_v18 = vmul.f32 1.442695, %v1172_v48 }
 0x755   :  { %1908 = vpow2.f32 %v1175_v18 }
 0x75e   :  { %v1907_v46 = vpop.eup %1906 }
 0x75f   :  { %v1177_v20 = vsel %vm842_vm2, %v1907_v46, 0.0 }
 0x760   :  { %1178 = vadd.xlane.f32.xlu0 %v1177_v20 }
 0x762   :  { %v1909_v30 = vpop.eup %1908 }
 0x763   :  { %v1180_v51 = vsel %vm842_vm2, %v1909_v30, 0.0 }
 0x764   :  { %1181 = vadd.xlane.f32.xlu1 %v1180_v51 }
 0x776   :  { %1239 = vrot.lane.b32.xlu0 %v2275_v42, %s1989_s23 }
 0x77a   :  { %1318 = vrot.lane.b32.xlu0 %v2503_v26, %s1989_s23 }
 0x77e   :  { %1316 = vrot.lane.b32.xlu0 %v2504_v29, %s1989_s23 }
 0x782   :  { %1314 = vrot.lane.b32.xlu0 %v2505_v10, %s1989_s23 }
 0x786   :  { %1050 = vrot.lane.b32.xlu0 %v1041_v28, %s1986_s0 }
 0x78a   :  { %1060 = vrot.lane.b32.xlu0 %v2240_v17, %s1989_s23 }
 0x7e9   :  { %v1179_v9 = vpop.xlane.xlu0 %1178 }
 0x7ea   :  { %1910 = vrcp.f32 %v1179_v9 }
 0x7ed   :  { %v1182_v19 = vpop.xlane.xlu1 %1181  ;;  %v1240_v17 = vpop.permute.xlu0 %1239 }
 0x7ee   :  { %1912 = vrcp.f32 %v1182_v19 }
 0x7f7   :  { %v1911_v25 = vpop.eup %1910 }
 0x7f8   :  { %v1185_v42 = vmul.f32 %v1911_v25, %v1179_v9 }
 0x7fa   :  { %v1187_v31 = vsub.f32 2.0, %v1185_v42 }
 0x7fb   :  { %v1913_v32 = vpop.eup %1912 }
 0x7fc   :  { %v1186_v26 = vmul.f32 %v1913_v32, %v1182_v19  ;;  %v1189_v36 = vmul.f32 %v1911_v25, %v1187_v31 }
 0x7fe   :  { %v1188_v11 = vsub.f32 2.0, %v1186_v26  ;;  %v1191_v27 = vmul.f32 %v1907_v46, %v1189_v36 }
 0x800   :  { %v1190_v29 = vmul.f32 %v1913_v32, %v1188_v11 }
 0x802   :  { %v1192_v50 = vmul.f32 %v1909_v30, %v1190_v29 }
 0x804   :  { %v1193_v10 = vpack.c.bf16 %v1192_v50, %v1191_v27 }
 0x806   :  { %1816 = vmatmul.mubr.msk.bf16.vlgmr.msra.gmra.mxu1 %vm842_vm2, %v1193_v10 }
 0x807   :  { %1820 = vmatpush3.bf16.xpose.msra.mxu1 %v2337_v21  ;;  %1827 = vmatprep.mubr.msk.bf16.mxu1 %vm1988_vm1, %v2498_v2 }
 0x808   :  { %1821 = vmatprep.subr.bf16.mxu1 %v2498_v2 }
 0x80f   :  { %1822 = vmatpush3.bf16.xpose.msra.mxu1 %v2346_v5 }
 0x810   :  { %1823 = vmatprep.subr.bf16.mxu1 %v2498_v2 }
 0x817   :  { %1824 = vmatpush3.bf16.xpose.msra.mxu1 %v2352_v54 }
 0x818   :  { %1825 = vmatprep.subr.bf16.mxu1 %v2498_v2 }
 0x81f   :  { %1826 = vmatpush3.bf16.xpose.msra.mxu1 %v2358_v45 }
 0x826   :  { %1828 = vmatmul.mubr.msk.bf16.vlgmr.msra.gmra.mxu1 %vm147_vm0, %v1240_v17 }
 0x8c6   :  { %v2400_v14 = vpop.f32.mrf.mxu1 }
 0x8c8   :  { %v1817_v23 = vpop.f32.mrf.mxu1 }
 0x8ca   :  { %v2402_v49 = vpop.f32.mrf.mxu1 }
 0x8cc   :  { %v1818_v22 = vpop.f32.mrf.mxu1 }
 0x8e6   :  { %v1278_v35 = vpop.f32.mrf.mxu1 }
 0x8e7   :  { %v1279_v44 = vadd.f32 %v1278_v35, %v2308_v37 }
 0x8e8   :  { %v1829_v3 = vpop.f32.mrf.mxu1 }
 0x8e9   :  { %v1285_v55 = vsel %vm842_vm2, %v1279_v44, -inf }
 0x8ea   :  { %1286 = vmax.xlane.f32.xlu1 %v1285_v55  ;;  %v1281_v4 = vpop.f32.mrf.mxu1 }
 0x8eb   :  { %v1282_v21 = vadd.f32 %v1281_v4, %v2311_v33  ;;  %v1319_v33 = vpop.permute.xlu0 %1318 }
 0x8ec   :  { %v1830_v52 = vpop.f32.mrf.mxu1 }
 0x8ed   :  { %v1288_v5 = vsel %vm842_vm2, %v1282_v21, -inf }
 0x8ee   :  { %1289 = vmax.xlane.f32.xlu1 %v1288_v5 }
 0x8ef   :  { %v1317_v39 = vpop.permute.xlu0 %1316 }
 0x8f3   :  { %v1315_v40 = vpop.permute.xlu0 %1314 }
 0x8f7   :  { %v1051_v43 = vpop.permute.xlu0 %1050 }
 0x8f8   :  { %v1056_v62 = vsel %vm147_vm0, %v2366_v13, %v1051_v43 }
 0x8fb   :  { %v1061_v41 = vpop.permute.xlu0 %1060 }
 0x8fc   :  { %v2418_v1 = vadd.f32 %v1061_v41, %v1056_v62  ;;  %v1990_v41 = vmov -1.0  }
 0x8fe   :  { %v2421_v63 = vmul.f32 0.70710677, %v2418_v1 }
 0x900   :  { %vm1072_vm3 = vcmp.ge.f32.partialorder %v2421_v63, 0.0 }
 0x901   :  { %v1074_v62 = vsel %vm1072_vm3, 1.0, %v1990_v41 }
 0x973   :  { %v1287_v8 = vpop.xlane.xlu1 %1286 }
 0x974   :  { %v1291_v54 = vsub.f32 %v1279_v44, %v1287_v8 }
 0x976   :  { %v1293_v15 = vmul.f32 1.442695, %v1291_v54 }
 0x977   :  { %v1290_v45 = vpop.xlane.xlu1 %1289 }
 0x978   :  { %1914 = vpow2.f32 %v1293_v15  ;;  %v1292_v57 = vsub.f32 %v1282_v21, %v1290_v45 }
 0x97a   :  { %v1295_v34 = vmul.f32 1.442695, %v1292_v57 }
 0x97c   :  { %1916 = vpow2.f32 %v1295_v34 }
 0x985   :  { %v1915_v37 = vpop.eup %1914 }
 0x986   :  { %v1297_v28 = vsel %vm842_vm2, %v1915_v37, 0.0 }
 0x987   :  { %1298 = vadd.xlane.f32.xlu1 %v1297_v28 }
 0x989   :  { %v1917_v38 = vpop.eup %1916 }
 0x98a   :  { %v1300_v61 = vsel %vm842_vm2, %v1917_v38, 0.0 }
 0x98b   :  { %1301 = vadd.xlane.f32.xlu1 %v1300_v61 }
 0x99c   :  { %1320 = vrot.lane.b32.xlu1 %v2502_v53, %s1989_s23  ;;  %v1076_v53 = vand.u32 2147483647, %v2421_v63 }
 0x99e   :  { %v1078_v0 = vmul.f32 0.3275911, %v1076_v53  ;;  %v1102_v27 = vsub.f32 0.0, %v1076_v53 }
 0x9a0   :  { %1052 = vrot.lane.b32.xlu1 %v2370_v59, %s1986_s0  ;;  %v1080_v59 = vadd.f32 1.0, %v1078_v0  ;;  %v1104_v22 = vmul.f32 %v1102_v27, %v1076_v53 }
 0x9a2   :  { %1918 = vrcp.f32 %v1080_v59  ;;  %v1106_v35 = vmul.f32 1.442695, %v1104_v22 }
 0x9a4   :  { %1062 = vrot.lane.b32.xlu1 %v2246_v6, %s1989_s23 }
 0x9af   :  { %v1919_v60 = vpop.eup %1918 }
 0x9b0   :  { %v1084_v48 = vmul.f32 1.0614054, %v1919_v60 }
 0x9b2   :  { %v1086_v19 = vadd.f32 -1.4531521, %v1084_v48 }
 0x9b4   :  { %v1088_v36 = vmul.f32 %v1919_v60, %v1086_v19 }
 0x9b6   :  { %v1090_v17 = vadd.f32 1.4214138, %v1088_v36 }
 0xa10   :  { %v1299_v12 = vpop.xlane.xlu1 %1298 }
 0xa11   :  { %1920 = vrcp.f32 %v1299_v12 }
 0xa14   :  { %v1302_v6 = vpop.xlane.xlu1 %1301 }
 0xa15   :  { %1922 = vrcp.f32 %v1302_v6 }
 0xa18   :  { %v1321_v7 = vpop.permute.xlu1 %1320 }
 0xa19   :  { %1832 = vmatpush3.bf16.msra.mxu0 %v1321_v7 }
 0xa1a   :  { %1833 = vmatprep.subr.bf16.mxu0 %v2498_v2 }
 0xa1c   :  { %v1053_v13 = vpop.permute.xlu1 %1052 }
 0xa1d   :  { %1834 = vmatpush3.bf16.msra.mxu0 %v1319_v33  ;;  %v1057_v46 = vsel %vm147_vm0, %v2368_v58, %v1053_v13 }
 0xa1e   :  { %v1921_v24 = vpop.eup %1920  ;;  %1835 = vmatprep.subr.bf16.mxu0 %v2498_v2 }
 0xa1f   :  { %v1305_v18 = vmul.f32 %v1921_v24, %v1299_v12 }
 0xa20   :  { %v1063_v20 = vpop.permute.xlu1 %1062 }
 0xa21   :  { %v1307_v30 = vsub.f32 2.0, %v1305_v18  ;;  %v1067_v51 = vadd.f32 %v1063_v20, %v1057_v46  ;;  %1836 = vmatpush3.bf16.msra.mxu0 %v1317_v39 }
 0xa22   :  { %v1923_v9 = vpop.eup %1922  ;;  %1837 = vmatprep.subr.bf16.mxu0 %v2498_v2  ;;  %v1092_v2 = vmul.f32 %v1919_v60, %v1090_v17 }
 0xa23   :  { %v1306_v25 = vmul.f32 %v1923_v9, %v1302_v6  ;;  %v1071_v42 = vmul.f32 0.70710677, %v1067_v51  ;;  %v1309_v31 = vmul.f32 %v1921_v24, %v1307_v30  ;;  %v1069_v13 = vmul.f32 0.5, %v1067_v51  ;;  %v1889_v51 = vld [vmem:[%s2463_s1 + $0xa0] sm:$0xff]  }
 0xa24   :  { %v1094_v3 = vadd.f32 -0.28449672, %v1092_v2 }
 0xa25   :  { %v1308_v32 = vsub.f32 2.0, %v1306_v25  ;;  %v1077_v26 = vand.u32 2147483647, %v1071_v42  ;;  %1838 = vmatpush3.bf16.msra.mxu0 %v1315_v40  ;;  %v1311_v50 = vmul.f32 %v1915_v37, %v1309_v31  ;;  %vm1073_vm4 = vcmp.ge.f32.partialorder %v1071_v42, 0.0 }
 0xa26   :  { %v1096_v4 = vmul.f32 %v1919_v60, %v1094_v3  ;;  %v1075_v12 = vsel %vm1073_vm4, 1.0, %v1990_v41 }
 0xa27   :  { %v1310_v11 = vmul.f32 %v1923_v9, %v1308_v32  ;;  %v1079_v29 = vmul.f32 0.3275911, %v1077_v26  ;;  %v1103_v44 = vsub.f32 0.0, %v1077_v26 }
 0xa28   :  { %v1098_v8 = vadd.f32 0.2548296, %v1096_v4 }
 0xa29   :  { %v1312_v58 = vmul.f32 %v1917_v38, %v1310_v11  ;;  %v1081_v10 = vadd.f32 1.0, %v1079_v29  ;;  %v1105_v55 = vmul.f32 %v1103_v44, %v1077_v26 }
 0xa2a   :  { %v1100_v45 = vmul.f32 %v1919_v60, %v1098_v8  ;;  %v1068_v60 = vmul.f32 0.5, %v2418_v1  ;;  %v1888_v1 = vld [vmem:[%s2463_s1 + $0xa8] sm:$0xff]   ;;  %s1991_s1 = smov [#allocation5]  }
 0xa2b   :  { %v1313_v23 = vpack.c.bf16 %v1312_v58, %v1311_v50  ;;  %1924 = vrcp.f32 %v1081_v10  ;;  %v1108_v5 = vmul.f32 1.442695, %v1105_v55  ;;  %1843 = vmatprep.subr.bf16.mxu0 %v1888_v1 }
 0xa2c   :  { %1926 = vpow2.f32 %v1106_v35 }
 0xa2d   :  { %1840 = vmatmul.mubr.msk.bf16.vlgmr.msra.gmra.mxu0 %vm842_vm2, %v1313_v23  ;;  %1928 = vpow2.f32 %v1108_v5 }
 0xa2e   :  { %1844 = vmatpush3.bf16.msra.mxu0 %v1888_v1  ;;  %v2510_v1 = vsub.s32 3, %v2077_v16 }
 0xa2f   :  { %1845 = vmatprep.subr.bf16.mxu0 %v1889_v51 }
 0xa32   :  { %1846 = vmatpush3.bf16.msra.mxu0 %v1889_v51 }
 0xa38   :  { %v1925_v21 = vpop.eup %1924 }
 0xa39   :  { %v1085_v52 = vmul.f32 1.0614054, %v1925_v21  ;;  %v1927_v37 = vpop.eup %1926 }
 0xa3a   :  { %v1110_v28 = vmul.f32 %v1927_v37, %v1100_v45  ;;  %v1929_v43 = vpop.eup %1928 }
 0xa3b   :  { %v1087_v54 = vadd.f32 -1.4531521, %v1085_v52 }
 0xa3c   :  { %v1112_v33 = vsub.f32 1.0, %v1110_v28 }
 0xa3d   :  { %v1089_v15 = vmul.f32 %v1925_v21, %v1087_v54 }
 0xa3e   :  { %v1114_v53 = vmul.f32 %v1112_v33, %v1074_v62 }
 0xa3f   :  { %v1091_v57 = vadd.f32 1.4214138, %v1089_v15 }
 0xa40   :  { %v1116_v6 = vadd.f32 1.0, %v1114_v53 }
 0xa41   :  { %v1093_v34 = vmul.f32 %v1925_v21, %v1091_v57 }
 0xa42   :  { %v1118_v63 = vmul.f32 %v1116_v6, %v1068_v60 }
 0xa43   :  { %v1095_v38 = vadd.f32 -0.28449672, %v1093_v34 }
 0xa45   :  { %v1097_v61 = vmul.f32 %v1925_v21, %v1095_v38 }
 0xa47   :  { %v1099_v39 = vadd.f32 0.2548296, %v1097_v61 }
 0xa49   :  { %v1101_v40 = vmul.f32 %v1925_v21, %v1099_v39 }
 0xa4b   :  { %v1111_v0 = vmul.f32 %v1929_v43, %v1101_v40 }
 0xa4d   :  { %v1113_v59 = vsub.f32 1.0, %v1111_v0 }
 0xa4f   :  { %v1115_v7 = vmul.f32 %v1113_v59, %v1075_v12 }
 0xa51   :  { %v1117_v24 = vadd.f32 1.0, %v1115_v7 }
 0xa53   :  { %v1119_v48 = vmul.f32 %v1117_v24, %v1069_v13 }
 0xa55   :  { %v1442_v18 = vpack.c.bf16 %v1119_v48, %v1118_v63 }
 0xa57   :  { %1847 = vmatprep.mubr.msk.bf16.mxu0 %vm1460_vm5, %v1442_v18 }
 0xaed   :  { %v1363_v46 = vpop.f32.mrf.mxu0 }
 0xaee   :  { %1372 = vrot.lane.b32.xlu0 %v1363_v46, %s1986_s0 }
 0xaef   :  { %v1841_v20 = vpop.f32.mrf.mxu0 }
 0xaf1   :  { %v1366_v30 = vpop.f32.mrf.mxu0 }
 0xaf2   :  { %1382 = vrot.lane.b32.xlu0 %v2244_v47, %s1989_s23  ;;  %1374 = vrot.lane.b32.xlu1 %v1366_v30, %s1986_s0  ;;  %s1526_s0 = sshll.u32 %s1991_s1, 4  ;;  %s1527_s0 = int_to_ptr.vmem [resolvable:$true] %s1526_s0 }
 0xaf3   :  { %v1842_v9 = vpop.f32.mrf.mxu0  ;;  %s1959_s27 = scalar_lea.vmem %s1527_s0, 512  ;;  %p1964_p6 = scmp.lt.s32.totalorder %s1527_s0, %s1527_s0 }
 0xaf4   :  { %v1938_v9 = vld [vmem:[#allocation2 + $0x20] sm:$0xff]  ;;  %p1960_p5 = scmp.ne.s32.totalorder %s1527_s0, %s1959_s27  ;;  %p1965_p7 = scmp.lt.s32.totalorder %s1959_s27, %s1959_s27 }
 0xaf5   :  { %v1447_v51 = vrot.slane %v1938_v9, %v2510_v1 }
 0xaf6   :  { %1384 = vrot.lane.b32.xlu1 %v2242_v56, %s1989_s23  ;;  %p1966_p8 = por %p1965_p7, %p1964_p6 }
 0xaf8   :  { %p1967_p9 = pnand %p1966_p8, %p1960_p5 }
 0xb60   :  { %v1373_v19 = vpop.permute.xlu0 %1372 }
 0xb61   :  { %v1378_v47 = vsel %vm147_vm0, %v2400_v14, %v1373_v19 }
 0xb64   :  { %v1383_v25 = vpop.permute.xlu0 %1382  ;;  %v1375_v42 = vpop.permute.xlu1 %1374 }
 0xb65   :  { %v1388_v31 = vadd.f32 %v1383_v25, %v1378_v47  ;;  %v1379_v32 = vsel %vm147_vm0, %v2402_v49, %v1375_v42 }
 0xb67   :  { %v1392_v56 = vmul.f32 0.70710677, %v1388_v31  ;;  %v1390_v63 = vmul.f32 0.5, %v1388_v31 }
 0xb68   :  { %v1385_v26 = vpop.permute.xlu1 %1384 }
 0xb69   :  { %v1398_v36 = vand.u32 2147483647, %v1392_v56  ;;  %v1389_v11 = vadd.f32 %v1385_v26, %v1379_v32  ;;  %vm1394_vm6 = vcmp.ge.f32.partialorder %v1392_v56, 0.0 }
 0xb6a   :  { %v1396_v59 = vsel %vm1394_vm6, 1.0, %v1990_v41 }
 0xb6b   :  { %v1400_v29 = vmul.f32 0.3275911, %v1398_v36  ;;  %v1393_v27 = vmul.f32 0.70710677, %v1389_v11  ;;  %v1424_v23 = vsub.f32 0.0, %v1398_v36  ;;  %v1391_v48 = vmul.f32 0.5, %v1389_v11 }
 0xb6d   :  { %v1402_v50 = vadd.f32 1.0, %v1400_v29  ;;  %v1399_v58 = vand.u32 2147483647, %v1393_v27  ;;  %v1426_v14 = vmul.f32 %v1424_v23, %v1398_v36  ;;  %vm1395_vm7 = vcmp.ge.f32.partialorder %v1393_v27, 0.0 }
 0xb6e   :  { %v1397_v60 = vsel %vm1395_vm7, 1.0, %v1990_v41 }
 0xb6f   :  { %1930 = vrcp.f32 %v1402_v50  ;;  %v1401_v10 = vmul.f32 0.3275911, %v1399_v58  ;;  %v1425_v22 = vsub.f32 0.0, %v1399_v58  ;;  %v1428_v44 = vmul.f32 1.442695, %v1426_v14 }
 0xb71   :  { %v1403_v17 = vadd.f32 1.0, %v1401_v10  ;;  %v1427_v3 = vmul.f32 %v1425_v22, %v1399_v58 }
 0xb73   :  { %1932 = vrcp.f32 %v1403_v17  ;;  %v1430_v52 = vmul.f32 1.442695, %v1427_v3 }
 0xb74   :  { %1934 = vpow2.f32 %v1428_v44 }
 0xb75   :  { %1936 = vpow2.f32 %v1430_v52 }
 0xb7c   :  { %v1931_v2 = vpop.eup %1930 }
 0xb7d   :  { %v1406_v35 = vmul.f32 1.0614054, %v1931_v2 }
 0xb7f   :  { %v1408_v55 = vadd.f32 -1.4531521, %v1406_v35 }
 0xb80   :  { %v1933_v49 = vpop.eup %1932 }
 0xb81   :  { %v1410_v4 = vmul.f32 %v1931_v2, %v1408_v55  ;;  %v1407_v21 = vmul.f32 1.0614054, %v1933_v49  ;;  %v1935_v39 = vpop.eup %1934 }
 0xb82   :  { %v1937_v0 = vpop.eup %1936 }
 0xb83   :  { %v1412_v5 = vadd.f32 1.4214138, %v1410_v4  ;;  %v1409_v8 = vadd.f32 -1.4531521, %v1407_v21 }
 0xb85   :  { %v1414_v54 = vmul.f32 %v1931_v2, %v1412_v5  ;;  %v1411_v15 = vmul.f32 %v1933_v49, %v1409_v8 }
 0xb87   :  { %v1416_v45 = vadd.f32 -0.28449672, %v1414_v54  ;;  %v1413_v57 = vadd.f32 1.4214138, %v1411_v15 }
 0xb89   :  { %v1418_v34 = vmul.f32 %v1931_v2, %v1416_v45  ;;  %v1415_v37 = vmul.f32 %v1933_v49, %v1413_v57 }
 0xb8b   :  { %v1420_v28 = vadd.f32 0.2548296, %v1418_v34  ;;  %v1417_v38 = vadd.f32 -0.28449672, %v1415_v37 }
 0xb8d   :  { %v1422_v61 = vmul.f32 %v1931_v2, %v1420_v28  ;;  %v1419_v33 = vmul.f32 %v1933_v49, %v1417_v38 }
 0xb8f   :  { %v1432_v40 = vmul.f32 %v1935_v39, %v1422_v61  ;;  %v1421_v43 = vadd.f32 0.2548296, %v1419_v33 }
 0xb91   :  { %v1434_v62 = vsub.f32 1.0, %v1432_v40  ;;  %v1423_v53 = vmul.f32 %v1933_v49, %v1421_v43 }
 0xb93   :  { %v1436_v12 = vmul.f32 %v1434_v62, %v1396_v59  ;;  %v1433_v6 = vmul.f32 %v1937_v0, %v1423_v53 }
 0xb95   :  { %v1435_v7 = vsub.f32 1.0, %v1433_v6  ;;  %v1438_v13 = vadd.f32 1.0, %v1436_v12 }
 0xb97   :  { %v1437_v24 = vmul.f32 %v1435_v7, %v1397_v60  ;;  %v1440_v46 = vmul.f32 %v1438_v13, %v1390_v63 }
 0xb99   :  { %v1439_v18 = vadd.f32 1.0, %v1437_v24 }
 0xb9b   :  { %v1441_v20 = vmul.f32 %v1439_v18, %v1391_v48 }
 0xb9d   :  { %v1443_v30 = vpack.c.bf16 %v1441_v20, %v1440_v46 }
 0xb9f   :  { %1848 = vmatmul.mubr.msk.bf16.vlgmr.msra.gmra.mxu0 %vm1460_vm5, %v1443_v30 }
 0xc5f   :  { %v1849_v19 = vpop.f32.mrf.mxu0 }
 0xc60   :  { %v1510_v47 = vadd.f32 %v1849_v19, %v1447_v51 }
 0xc61   :  { %v1501_v25 = vpop.f32.mrf.mxu0 }
 0xc62   :  { %1519 = vst.msk [vmem:[#allocation5 + $0x10] sm:$0xff] %vm1516_vm8, %v1510_v47  ;;  %v1502_v41 = vadd.f32 %v1501_v25, %v1447_v51 }
 0xc63   :  { %v1850_v42 = vpop.f32.mrf.mxu0 }
 0xc64   :  { %1517 = vst.msk [vmem:[#allocation5] sm:$0xff] %vm1516_vm8, %v1502_v41  ;;  %v1513_v31 = vadd.f32 %v1850_v42, %v1447_v51 }
 0xc65   :  { %v1504_v56 = vpop.f32.mrf.mxu0 }
 0xc66   :  { %1520 = vst.msk [vmem:[#allocation5 + $0x18] sm:$0xff] %vm1516_vm8, %v1513_v31  ;;  %v1505_v32 = vadd.f32 %v1504_v56, %v1447_v51 }
 0xc68   :  { %1518 = vst.msk [vmem:[#allocation5 + $0x8] sm:$0xff] %vm1516_vm8, %v1505_v32 }
 0xc69   :  { %1970 = shalt.err (!%p1967_p9)
}
 0xc6a   :  { %1532 = dma.vmem_to_hbm [thread:$0]  %s1527_s0, 512, %s2465_s3, [#allocation4], %s1984_s15, %s1984_s15, %s1985_s16  }
 0xc6b   :  { %1981 = dma.done.wait [#allocation4], 512  }
 0xc6c   :  { %1982 = vsyncadd [#allocation4], 4294966784 }
 0xc6d   :  { %1536 = vsyncpa [#allocation3], 1 }
 0xc6e   :  { %1537 = vsyncpa [#allocation4], 1 }

</bundles_post_ra>
